<compile_context>
chip_gen: v5e
topology: v5e:2x2
jax: 0.10.0
libtpu: 0.0.40
codegen_flags: <defaults>
</compile_context>

<pallas_src>
import functools

import jax
import jax.numpy as jnp
import numpy as np
from jax import lax
from jax.experimental import pallas as pl
from jax.experimental.pallas import tpu as pltpu

_VMEM_LIMIT = 32 * 1024 * 1024  # explicit, small footprint; fits v5e/v6e/v7x


# ----------------------------------------------------------------------------
# Fused stage kernel: [optional BN+ReLU of previous stage] -> ConvTranspose2d
# -> interleave + zero halo -> KxK Conv2d -> partial BN statistics.
# One grid step == one batch element; everything stays in VMEM.
# ----------------------------------------------------------------------------
def _stage_kernel(*refs, apply_in_act):
    if apply_in_act:
        (a_ref, sc_ref, sh_ref, wt_ref, bt_ref, p_ref, mc_ref, t_ref,
         z_ref, sum_ref, sq_ref) = refs
    else:
        (a_ref, wt_ref, bt_ref, p_ref, mc_ref, t_ref,
         z_ref, sum_ref, sq_ref) = refs

    s = p_ref.shape[0]          # upsample factor
    K = mc_ref.shape[0]         # conv kernel size
    Hp = p_ref.shape[1]         # padded image rows
    Ho = z_ref.shape[1]         # conv output rows
    WpC = wt_ref.shape[2]       # padded row width * channels
    WoCout = mc_ref.shape[2]    # output row width * out-channels

    a = a_ref[0]                                            # (H, W*Cin)
    if apply_in_act:            # previous stage's BN+ReLU fused into the load
        a = jnp.maximum(a * sc_ref[...] + sh_ref[...], 0.0)

    # Transposed conv (kernel == stride == s): one matmul per sub-row phase ki,
    # then a 0/1 placement matmul interleaves rows and creates the zero halo.
    pad_img = jnp.zeros((Hp, WpC), jnp.float32)
    for ki in range(s):                                     # static unroll
        y_ki = jnp.dot(a, wt_ref[ki],
                       preferred_element_type=jnp.float32) + bt_ref[...]
        pad_img = pad_img + jnp.dot(p_ref[ki], y_ki,
                                    preferred_element_type=jnp.float32)

    # KxK conv as K matmuls over contiguous row bands of the padded image.
    # Contraction depth is Wp*Cin (not Cin) and the output stays lane-packed.
    acc = jnp.zeros((Ho, WoCout), jnp.float32)
    for kh in range(K):                                     # static unroll
        acc = acc + jnp.dot(pad_img[kh:kh + Ho, :], mc_ref[kh],
                            preferred_element_type=jnp.float32)
    # NOTE: conv bias intentionally dropped — cancelled by BN mean subtraction.

    # Partial BatchNorm statistics (two-phase BN), reduced on the host.
    col_sum = jnp.sum(acc, axis=0, keepdims=True)           # (1, Wo*Cout)
    col_sq = jnp.sum(acc * acc, axis=0, keepdims=True)
    sum_ref[...] = jnp.dot(col_sum, t_ref[...],
                           preferred_element_type=jnp.float32)[None]
    sq_ref[...] = jnp.dot(col_sq, t_ref[...],
                          preferred_element_type=jnp.float32)[None]

    z_ref[...] = acc[None]                                  # (1, Ho, Wo*Cout)


def _finalize_kernel(z_ref, sc_ref, sh_ref, sel_ref, o_ref):
    """BN2 + ReLU2 fused with the lane-unpack to NCHW (0/1 selection matmuls)."""
    z = z_ref[0]                                            # (Ho, Wo*Cout)
    y = jnp.maximum(z * sc_ref[...] + sh_ref[...], 0.0)     # (Ho, Wo*Cout)
    Cout = o_ref.shape[1]
    for c in range(Cout):                                   # static unroll
        # (Ho, Wo*Cout) @ (Wo*Cout, Wo) picks channel c of every column.
        o_ref[0, c] = jnp.dot(y, sel_ref[c],
                              preferred_element_type=jnp.float32)


# ----------------------------------------------------------------------------
# Host-side constant folding of the stage weights into matmul operands
# ----------------------------------------------------------------------------
def _build_stage_consts(wt, bt, wc, H, W, s, K, pad):
    Cin = wt.shape[0]      # tconv input channels (== stage input channels)
    Ct = wt.shape[-1]      # tconv output channels
    Cout = wc.shape[-1]    # conv output channels
    Hs, Ws = H * s, W * s
    Hp, Wp = Hs + 2 * pad, Ws + 2 * pad
    Ho, Wo = Hp - K + 1, Wp - K + 1

    # (s, W*Cin, Wp*Ct): block-diagonal tconv weight per sub-row phase ki with
    # the horizontal zero halo already folded in.
    eye_w = jnp.asarray(np.eye(W, dtype=np.float32))
    wt_big = []
    for ki in range(s):
        bd = jnp.einsum("jJ,akc->jaJkc", eye_w, wt[:, ki])   # (W,Cin,W,s,Ct)
        bd = bd.reshape(W * Cin, Ws * Ct)
        wt_big.append(jnp.pad(bd, ((0, 0), (pad * Ct, pad * Ct))))
    wt_big = jnp.stack(wt_big)

    # (1, Wp*Ct): tconv bias along one padded row (zero inside the halo).
    bt_row = jnp.pad(jnp.tile(bt, (Ws,))[None, :], ((0, 0), (pad * Ct, pad * Ct)))

    # (s, Hp, H): 0/1 placement — input row i goes to padded row pad + i*s + ki.
    p_put = np.zeros((s, Hp, H), np.float32)
    for ki in range(s):
        p_put[ki, pad + np.arange(H) * s + ki, np.arange(H)] = 1.0
    p_put = jnp.asarray(p_put)

    # (K, Wp*Ct, Wo*Cout): banded conv matrix for kernel row kh — one matmul
    # against padded rows [kh:kh+Ho] applies all K horizontal taps at once.
    mc = []
    for kh in range(K):
        m4 = jnp.zeros((Wp, Ct, Wo, Cout), jnp.float32)
        for kw in range(K):
            sel = np.zeros((Wp, Wo), np.float32)
            sel[kw + np.arange(Wo), np.arange(Wo)] = 1.0
            m4 = m4 + jnp.asarray(sel)[:, None, :, None] * wc[kh, kw][None, :, None, :]
        mc.append(m4.reshape(Wp * Ct, Wo * Cout))
    mc = jnp.stack(mc)

    # (Wo*Cout, Cout): folds the (col, channel)-packed lanes into channel sums.
    t_fold = jnp.asarray(np.tile(np.eye(Cout, dtype=np.float32), (Wo, 1)))

    dims = dict(H=H, W=W, Cin=Cin, Ct=Ct, Cout=Cout, Hp=Hp, Wp=Wp,
                Ho=Ho, Wo=Wo, s=s, K=K)
    return dict(wt_big=wt_big, bt_row=bt_row, p_put=p_put, mc=mc,
                t_fold=t_fold, dims=dims)


def _build_channel_select(Cout, Wo):
    # (Cout, Wo*Cout, Wo) 0/1 matrices: sel[c][wo*Cout + c, wo] = 1.
    sel = np.zeros((Cout, Wo * Cout, Wo), np.float32)
    cols = np.arange(Wo)
    for c in range(Cout):
        sel[c, cols * Cout + c, cols] = 1.0
    return jnp.asarray(sel)


# ----------------------------------------------------------------------------
# pallas_call wrappers
# ----------------------------------------------------------------------------
def _fused_stage(a_rows, consts, in_scale_row=None, in_shift_row=None):
    d = consts["dims"]
    B, H, WCin = a_rows.shape
    Ho, WoCout, Cout = d["Ho"], d["Wo"] * d["Cout"], d["Cout"]
    apply_in_act = in_scale_row is not None

    kernel = functools.partial(_stage_kernel, apply_in_act=apply_in_act)

    in_specs = [pl.BlockSpec((1, H, WCin), lambda b: (b, 0, 0))]
    args = [a_rows]
    if apply_in_act:
        in_specs += [pl.BlockSpec((1, WCin), lambda b: (0, 0)),
                     pl.BlockSpec((1, WCin), lambda b: (0, 0))]
        args += [in_scale_row, in_shift_row]
    in_specs += [
        pl.BlockSpec(consts["wt_big"].shape, lambda b: (0, 0, 0)),
        pl.BlockSpec(consts["bt_row"].shape, lambda b: (0, 0)),
        pl.BlockSpec(consts["p_put"].shape, lambda b: (0, 0, 0)),
        pl.BlockSpec(consts["mc"].shape, lambda b: (0, 0, 0)),
        pl.BlockSpec(consts["t_fold"].shape, lambda b: (0, 0)),
    ]
    args += [consts["wt_big"], consts["bt_row"], consts["p_put"],
             consts["mc"], consts["t_fold"]]

    out_shape = (
        jax.ShapeDtypeStruct((B, Ho, WoCout), jnp.float32),  # un-normalized conv
        jax.ShapeDtypeStruct((B, 1, Cout), jnp.float32),     # per-block chan sum
        jax.ShapeDtypeStruct((B, 1, Cout), jnp.float32),     # per-block chan sumsq
    )
    out_specs = (
        pl.BlockSpec((1, Ho, WoCout), lambda b: (b, 0, 0)),
        pl.BlockSpec((1, 1, Cout), lambda b: (b, 0, 0)),
        pl.BlockSpec((1, 1, Cout), lambda b: (b, 0, 0)),
    )

    return pl.pallas_call(
        kernel,
        grid=(B,),
        in_specs=in_specs,
        out_specs=out_specs,
        out_shape=out_shape,
        compiler_params=pltpu.CompilerParams(
            dimension_semantics=("parallel",),   # batch blocks are independent
            vmem_limit_bytes=_VMEM_LIMIT),
    )(*args)


def _finalize_nchw(z_rows, scale_row, shift_row, sel, Cout, Ho, Wo):
    B, _, WoC = z_rows.shape
    return pl.pallas_call(
        _finalize_kernel,
        grid=(B,),
        in_specs=[pl.BlockSpec((1, Ho, WoC), lambda b: (b, 0, 0)),
                  pl.BlockSpec((1, WoC), lambda b: (0, 0)),
                  pl.BlockSpec((1, WoC), lambda b: (0, 0)),
                  pl.BlockSpec(sel.shape, lambda b: (0, 0, 0))],
        out_specs=pl.BlockSpec((1, Cout, Ho, Wo), lambda b: (b, 0, 0, 0)),
        out_shape=jax.ShapeDtypeStruct((B, Cout, Ho, Wo), jnp.float32),
        compiler_params=pltpu.CompilerParams(
            dimension_semantics=("parallel",), vmem_limit_bytes=_VMEM_LIMIT),
    )(z_rows, scale_row, shift_row, sel)


def _bn_affine(chan_sum, chan_sq, gamma, beta, count, eps):
    total = jnp.sum(chan_sum, axis=(0, 1))
    total_sq = jnp.sum(chan_sq, axis=(0, 1))
    mean = total / count
    var = jnp.maximum(total_sq / count - mean * mean, 0.0)
    scale = gamma * lax.rsqrt(var + eps)
    shift = beta - mean * scale
    return scale, shift


# ----------------------------------------------------------------------------
# Reconstruct1 forward (Pallas) and a pure-JAX reference for verification
# ----------------------------------------------------------------------------
@functools.partial(jax.jit, static_argnames=("kernel_size", "scale_factor"))
def reconstruct1_forward(x, p, kernel_size, scale_factor, eps=1e-5):
    B, n_patch, hidden = x.shape
    h = w = int(np.sqrt(n_patch))
    pad = 1 if kernel_size == 3 else 0
    s, K = scale_factor, kernel_size

    # permute(0,2,1).view(B,hidden,h,w) in NCHW == this row layout in NHWC
    a0 = x.reshape(B, h, w * hidden)

    # stage 1: upsample1 -> conv1 (+ partial BN1 stats)
    c1 = _build_stage_consts(p["wt1"], p["bt1"], p["wc1"], h, w, s, K, pad)
    z1, s1, q1 = _fused_stage(a0, c1)
    d1 = c1["dims"]
    scale1, shift1 = _bn_affine(s1, q1, p["g1"], p["be1"],
                                B * d1["Ho"] * d1["Wo"], eps)

    # stage 2: (BN1+ReLU1 fused into the load) upsample2 -> conv2 (+ BN2 stats)
    c2 = _build_stage_consts(p["wt2"], p["bt2"], p["wc2"],
                             d1["Ho"], d1["Wo"], s, K, pad)
    z2, s2, q2 = _fused_stage(
        z1, c2,
        in_scale_row=jnp.tile(scale1, (d1["Wo"],))[None, :],
        in_shift_row=jnp.tile(shift1, (d1["Wo"],))[None, :])
    d2 = c2["dims"]
    scale2, shift2 = _bn_affine(s2, q2, p["g2"], p["be2"],
                                B * d2["Ho"] * d2["Wo"], eps)

    # finalize: BN2 + ReLU2 fused with the channel-unpack to NCHW (no separate
    # XLA transpose pass over the output).
    sel = _build_channel_select(d2["Cout"], d2["Wo"])
    out = _finalize_nchw(z2,
                         jnp.tile(scale2, (d2["Wo"],))[None, :],
                         jnp.tile(shift2, (d2["Wo"],))[None, :],
                         sel, d2["Cout"], d2["Ho"], d2["Wo"])
    return out


def reconstruct1_reference(x, p, kernel_size, scale_factor, eps=1e-5):
    B, n_patch, hidden = x.shape
    h = w = int(np.sqrt(n_patch))
    padding = 1 if kernel_size == 3 else 0
    s = scale_factor
    xi = x.reshape(B, h, w, hidden)

    def tconv_ref(xi, wt, bt):
        Bb, Hh, Ww, _ = xi.shape
        Cout = wt.shape[-1]
        y = jnp.einsum("bijc,cklo->bijklo", xi, wt)
        y = y.transpose(0, 1, 3, 2, 4, 5).reshape(Bb, Hh * s, Ww * s, Cout)
        return y + bt

    def cbr_ref(xi, wc, bc, g, be):
        y = lax.conv_general_dilated(
            xi, wc, window_strides=(1, 1),
            padding=((padding, padding), (padding, padding)),
            dimension_numbers=("NHWC", "HWIO", "NHWC")) + bc
        mean = y.mean(axis=(0, 1, 2), keepdims=True)
        var = jnp.square(y - mean).mean(axis=(0, 1, 2), keepdims=True)
        y = (y - mean) * lax.rsqrt(var + eps) * g + be
        return jnp.maximum(y, 0.0)

    u1 = tconv_ref(xi, p["wt1"], p["bt1"])
    c1 = cbr_ref(u1, p["wc1"], p["bc1"], p["g1"], p["be1"])
    u2 = tconv_ref(c1, p["wt2"], p["bt2"])
    c2 = cbr_ref(u2, p["wc2"], p["bc2"], p["g2"], p["be2"])
    return jnp.transpose(c2, (0, 3, 1, 2))


# ----------------------------------------------------------------------------
def init_params(key, in_channels, out_channels, kernel_size, scale_factor):
    ks = jax.random.split(key, 8)
    s, K = scale_factor, kernel_size
    C, Co = in_channels, out_channels

    def rnd(k, shape, scale):
        return jax.random.normal(k, shape, jnp.float32) * scale

    return {
        # ConvTranspose2d weights as (Cin, kH, kW, Cout)
        "wt1": rnd(ks[0], (C, s, s, C), 0.3), "bt1": rnd(ks[1], (C,), 0.1),
        "wt2": rnd(ks[2], (C, s, s, C), 0.3), "bt2": rnd(ks[3], (C,), 0.1),
        # Conv2d weights as HWIO (kH, kW, Cin, Cout)
        "wc1": rnd(ks[4], (K, K, C, Co), 0.2), "bc1": rnd(ks[5], (Co,), 0.1),
        "wc2": rnd(ks[6], (K, K, C, Co), 0.2), "bc2": rnd(ks[7], (Co,), 0.1),
        # BatchNorm affine params
        "g1": jnp.ones((Co,), jnp.float32) * 1.2,
        "be1": jnp.full((Co,), 0.05, jnp.float32),
        "g2": jnp.ones((Co,), jnp.float32) * 0.9,
        "be2": jnp.full((Co,), -0.03, jnp.float32),
    }


if __name__ == "__main__":
    # Shapes consistent with the module: hidden == in_channels, and the second
    # upsample requires out_channels == in_channels.
    B, n_patch, hidden = 2, 16, 4
    in_channels = out_channels = hidden
    kernel_size, scale_factor = 3, 2

    key = jax.random.PRNGKey(0)
    kx, kp = jax.random.split(key)
    x = jax.random.normal(kx, (B, n_patch, hidden), jnp.float32)
    params = init_params(kp, in_channels, out_channels, kernel_size, scale_factor)

    out = reconstruct1_forward(x, params, kernel_size=kernel_size,
                               scale_factor=scale_factor)
    out = jax.block_until_ready(out)

    ref = reconstruct1_reference(x, params, kernel_size, scale_factor)
    ref = jax.block_until_ready(ref)

    assert out.shape == (B, out_channels, 16, 16), out.shape
    # Differences vs. the reference come only from valid f32 accumulation-order
    # changes (matmul-decomposed conv, sum-of-squares BN statistics).
    np.testing.assert_allclose(np.asarray(out), np.asarray(ref),
                               rtol=1e-3, atol=1e-3)
    print("KERNEL_OK")
</pallas_src>

<mosaic_0001>
module attributes {stable_mosaic.version = 11 : i64} {
  func.func @_stage_kernel(%arg0: i32, %arg1: memref<1x4x16xf32, #tpu.memory_space<vmem>>, %arg2: memref<2x16x40xf32, #tpu.memory_space<vmem>>, %arg3: memref<1x40xf32, #tpu.memory_space<vmem>>, %arg4: memref<2x10x4xf32, #tpu.memory_space<vmem>>, %arg5: memref<3x40x32xf32, #tpu.memory_space<vmem>>, %arg6: memref<32x4xf32, #tpu.memory_space<vmem>>, %arg7: memref<1x8x32xf32, #tpu.memory_space<vmem>>, %arg8: memref<1x1x4xf32, #tpu.memory_space<vmem>>, %arg9: memref<1x1x4xf32, #tpu.memory_space<vmem>>) attributes {dimension_semantics = [#tpu.dimension_semantics<parallel>], iteration_bounds = array<i64: 2>, scalar_prefetch = 0 : i64, scratch_operands = 0 : i64, tpu.core_type = #tpu.core_type<tc>, window_params = [{transform_indices = @transform_0, window_bounds = array<i64: 1, 4, 16>}, {pipeline_mode = #tpu.pipeline_mode<synchronous>, transform_indices = @transform_1, window_bounds = array<i64: 2, 16, 40>}, {pipeline_mode = #tpu.pipeline_mode<synchronous>, transform_indices = @transform_2, window_bounds = array<i64: 1, 40>}, {pipeline_mode = #tpu.pipeline_mode<synchronous>, transform_indices = @transform_3, window_bounds = array<i64: 2, 10, 4>}, {pipeline_mode = #tpu.pipeline_mode<synchronous>, transform_indices = @transform_4, window_bounds = array<i64: 3, 40, 32>}, {pipeline_mode = #tpu.pipeline_mode<synchronous>, transform_indices = @transform_5, window_bounds = array<i64: 32, 4>}, {transform_indices = @transform_6, window_bounds = array<i64: 1, 8, 32>}, {transform_indices = @transform_7, window_bounds = array<i64: 1, 1, 4>}, {transform_indices = @transform_8, window_bounds = array<i64: 1, 1, 4>}]} {
    %c0 = arith.constant 0 : index
    %c0_0 = arith.constant 0 : index
    %c0_1 = arith.constant 0 : index
    %0 = vector.load %arg1[%c0, %c0_0, %c0_1] : memref<1x4x16xf32, #tpu.memory_space<vmem>>, vector<1x4x16xf32>
    %1 = vector.shape_cast %0 : vector<1x4x16xf32> to vector<4x16xf32>
    %cst = arith.constant 0.000000e+00 : f32
    %2 = vector.broadcast %cst : f32 to vector<10x40xf32>
    %c0_2 = arith.constant 0 : index
    %c0_3 = arith.constant 0 : index
    %c0_4 = arith.constant 0 : index
    %3 = vector.load %arg2[%c0_2, %c0_3, %c0_4] : memref<2x16x40xf32, #tpu.memory_space<vmem>>, vector<1x16x40xf32>
    %4 = vector.shape_cast %3 : vector<1x16x40xf32> to vector<16x40xf32>
    %cst_5 = arith.constant dense<0.000000e+00> : vector<4x40xf32>
    %5 = tpu.matmul %1, %4, %cst_5 {dimension_numbers = #tpu.dot_dimension_numbers<[1], [0], [0], [1], [0, 0, 1, 1], [], []>} : vector<4x16xf32>, vector<16x40xf32>, vector<4x40xf32> -> vector<4x40xf32>
    %c0_6 = arith.constant 0 : index
    %c0_7 = arith.constant 0 : index
    %6 = vector.load %arg3[%c0_6, %c0_7] : memref<1x40xf32, #tpu.memory_space<vmem>>, vector<1x40xf32>
    %7 = vector.broadcast %6 : vector<1x40xf32> to vector<4x40xf32>
    %8 = arith.addf %5, %7 : vector<4x40xf32>
    %c0_8 = arith.constant 0 : index
    %c0_9 = arith.constant 0 : index
    %c0_10 = arith.constant 0 : index
    %9 = vector.load %arg4[%c0_8, %c0_9, %c0_10] : memref<2x10x4xf32, #tpu.memory_space<vmem>>, vector<1x10x4xf32>
    %10 = vector.shape_cast %9 : vector<1x10x4xf32> to vector<10x4xf32>
    %cst_11 = arith.constant dense<0.000000e+00> : vector<10x40xf32>
    %11 = tpu.matmul %10, %8, %cst_11 {dimension_numbers = #tpu.dot_dimension_numbers<[1], [0], [0], [1], [0, 0, 1, 1], [], []>} : vector<10x4xf32>, vector<4x40xf32>, vector<10x40xf32> -> vector<10x40xf32>
    %12 = arith.addf %2, %11 : vector<10x40xf32>
    %c1 = arith.constant 1 : index
    %c0_12 = arith.constant 0 : index
    %c0_13 = arith.constant 0 : index
    %13 = vector.load %arg2[%c1, %c0_12, %c0_13] : memref<2x16x40xf32, #tpu.memory_space<vmem>>, vector<1x16x40xf32>
    %14 = vector.shape_cast %13 : vector<1x16x40xf32> to vector<16x40xf32>
    %cst_14 = arith.constant dense<0.000000e+00> : vector<4x40xf32>
    %15 = tpu.matmul %1, %14, %cst_14 {dimension_numbers = #tpu.dot_dimension_numbers<[1], [0], [0], [1], [0, 0, 1, 1], [], []>} : vector<4x16xf32>, vector<16x40xf32>, vector<4x40xf32> -> vector<4x40xf32>
    %c0_15 = arith.constant 0 : index
    %c0_16 = arith.constant 0 : index
    %16 = vector.load %arg3[%c0_15, %c0_16] : memref<1x40xf32, #tpu.memory_space<vmem>>, vector<1x40xf32>
    %17 = vector.broadcast %16 : vector<1x40xf32> to vector<4x40xf32>
    %18 = arith.addf %15, %17 : vector<4x40xf32>
    %c1_17 = arith.constant 1 : index
    %c0_18 = arith.constant 0 : index
    %c0_19 = arith.constant 0 : index
    %19 = vector.load %arg4[%c1_17, %c0_18, %c0_19] : memref<2x10x4xf32, #tpu.memory_space<vmem>>, vector<1x10x4xf32>
    %20 = vector.shape_cast %19 : vector<1x10x4xf32> to vector<10x4xf32>
    %cst_20 = arith.constant dense<0.000000e+00> : vector<10x40xf32>
    %21 = tpu.matmul %20, %18, %cst_20 {dimension_numbers = #tpu.dot_dimension_numbers<[1], [0], [0], [1], [0, 0, 1, 1], [], []>} : vector<10x4xf32>, vector<4x40xf32>, vector<10x40xf32> -> vector<10x40xf32>
    %22 = arith.addf %12, %21 : vector<10x40xf32>
    %cst_21 = arith.constant 0.000000e+00 : f32
    %23 = vector.broadcast %cst_21 : f32 to vector<8x32xf32>
    %24 = vector.extract_strided_slice %22 {offsets = [0, 0], sizes = [8, 40], strides = [1, 1]} : vector<10x40xf32> to vector<8x40xf32>
    %c0_22 = arith.constant 0 : index
    %c0_23 = arith.constant 0 : index
    %c0_24 = arith.constant 0 : index
    %25 = vector.load %arg5[%c0_22, %c0_23, %c0_24] : memref<3x40x32xf32, #tpu.memory_space<vmem>>, vector<1x40x32xf32>
    %26 = vector.shape_cast %25 : vector<1x40x32xf32> to vector<40x32xf32>
    %cst_25 = arith.constant dense<0.000000e+00> : vector<8x32xf32>
    %27 = tpu.matmul %24, %26, %cst_25 {dimension_numbers = #tpu.dot_dimension_numbers<[1], [0], [0], [1], [0, 0, 1, 1], [], []>} : vector<8x40xf32>, vector<40x32xf32>, vector<8x32xf32> -> vector<8x32xf32>
    %28 = arith.addf %23, %27 : vector<8x32xf32>
    %29 = vector.extract_strided_slice %22 {offsets = [1, 0], sizes = [8, 40], strides = [1, 1]} : vector<10x40xf32> to vector<8x40xf32>
    %c1_26 = arith.constant 1 : index
    %c0_27 = arith.constant 0 : index
    %c0_28 = arith.constant 0 : index
    %30 = vector.load %arg5[%c1_26, %c0_27, %c0_28] : memref<3x40x32xf32, #tpu.memory_space<vmem>>, vector<1x40x32xf32>
    %31 = vector.shape_cast %30 : vector<1x40x32xf32> to vector<40x32xf32>
    %cst_29 = arith.constant dense<0.000000e+00> : vector<8x32xf32>
    %32 = tpu.matmul %29, %31, %cst_29 {dimension_numbers = #tpu.dot_dimension_numbers<[1], [0], [0], [1], [0, 0, 1, 1], [], []>} : vector<8x40xf32>, vector<40x32xf32>, vector<8x32xf32> -> vector<8x32xf32>
    %33 = arith.addf %28, %32 : vector<8x32xf32>
    %34 = vector.extract_strided_slice %22 {offsets = [2, 0], sizes = [8, 40], strides = [1, 1]} : vector<10x40xf32> to vector<8x40xf32>
    %c2 = arith.constant 2 : index
    %c0_30 = arith.constant 0 : index
    %c0_31 = arith.constant 0 : index
    %35 = vector.load %arg5[%c2, %c0_30, %c0_31] : memref<3x40x32xf32, #tpu.memory_space<vmem>>, vector<1x40x32xf32>
    %36 = vector.shape_cast %35 : vector<1x40x32xf32> to vector<40x32xf32>
    %cst_32 = arith.constant dense<0.000000e+00> : vector<8x32xf32>
    %37 = tpu.matmul %34, %36, %cst_32 {dimension_numbers = #tpu.dot_dimension_numbers<[1], [0], [0], [1], [0, 0, 1, 1], [], []>} : vector<8x40xf32>, vector<40x32xf32>, vector<8x32xf32> -> vector<8x32xf32>
    %38 = arith.addf %33, %37 : vector<8x32xf32>
    %cst_33 = arith.constant dense<0.000000e+00> : vector<32xf32>
    %39 = vector.multi_reduction <add>, %38, %cst_33 [0] : vector<8x32xf32> to vector<32xf32>
    %40 = vector.shape_cast %39 : vector<32xf32> to vector<1x32xf32>
    %41 = arith.mulf %38, %38 : vector<8x32xf32>
    %cst_34 = arith.constant dense<0.000000e+00> : vector<32xf32>
    %42 = vector.multi_reduction <add>, %41, %cst_34 [0] : vector<8x32xf32> to vector<32xf32>
    %43 = vector.shape_cast %42 : vector<32xf32> to vector<1x32xf32>
    %c0_35 = arith.constant 0 : index
    %c0_36 = arith.constant 0 : index
    %44 = vector.load %arg6[%c0_35, %c0_36] : memref<32x4xf32, #tpu.memory_space<vmem>>, vector<32x4xf32>
    %cst_37 = arith.constant dense<0.000000e+00> : vector<1x4xf32>
    %45 = tpu.matmul %40, %44, %cst_37 {dimension_numbers = #tpu.dot_dimension_numbers<[1], [0], [0], [1], [0, 0, 1, 1], [], []>} : vector<1x32xf32>, vector<32x4xf32>, vector<1x4xf32> -> vector<1x4xf32>
    %46 = vector.shape_cast %45 : vector<1x4xf32> to vector<1x1x4xf32>
    %c0_38 = arith.constant 0 : index
    %c0_39 = arith.constant 0 : index
    %c0_40 = arith.constant 0 : index
    %47 = vector.load %arg8[%c0_38, %c0_39, %c0_40] : memref<1x1x4xf32, #tpu.memory_space<vmem>>, vector<1x1x4xf32>
    tpu.vector_store %arg8[%c0_38, %c0_39, %c0_40], %46 {strides = array<i32>} : memref<1x1x4xf32, #tpu.memory_space<vmem>>, vector<1x1x4xf32>,
    %c0_41 = arith.constant 0 : index
    %c0_42 = arith.constant 0 : index
    %48 = vector.load %arg6[%c0_41, %c0_42] : memref<32x4xf32, #tpu.memory_space<vmem>>, vector<32x4xf32>
    %cst_43 = arith.constant dense<0.000000e+00> : vector<1x4xf32>
    %49 = tpu.matmul %43, %48, %cst_43 {dimension_numbers = #tpu.dot_dimension_numbers<[1], [0], [0], [1], [0, 0, 1, 1], [], []>} : vector<1x32xf32>, vector<32x4xf32>, vector<1x4xf32> -> vector<1x4xf32>
    %50 = vector.shape_cast %49 : vector<1x4xf32> to vector<1x1x4xf32>
    %c0_44 = arith.constant 0 : index
    %c0_45 = arith.constant 0 : index
    %c0_46 = arith.constant 0 : index
    %51 = vector.load %arg9[%c0_44, %c0_45, %c0_46] : memref<1x1x4xf32, #tpu.memory_space<vmem>>, vector<1x1x4xf32>
    tpu.vector_store %arg9[%c0_44, %c0_45, %c0_46], %50 {strides = array<i32>} : memref<1x1x4xf32, #tpu.memory_space<vmem>>, vector<1x1x4xf32>,
    %52 = vector.shape_cast %38 : vector<8x32xf32> to vector<1x8x32xf32>
    %c0_47 = arith.constant 0 : index
    %c0_48 = arith.constant 0 : index
    %c0_49 = arith.constant 0 : index
    %53 = vector.load %arg7[%c0_47, %c0_48, %c0_49] : memref<1x8x32xf32, #tpu.memory_space<vmem>>, vector<1x8x32xf32>
    tpu.vector_store %arg7[%c0_47, %c0_48, %c0_49], %52 {strides = array<i32>} : memref<1x8x32xf32, #tpu.memory_space<vmem>>, vector<1x8x32xf32>,
    return
  }
  func.func @transform_0(%arg0: i32) -> (i32, i32, i32) {
    %c0_i32 = arith.constant 0 : i32
    %c0_i32_0 = arith.constant 0 : i32
    %c0_i32_1 = arith.constant 0 : i32
    return %arg0, %c0_i32, %c0_i32_0 : i32, i32, i32
  }
  func.func @transform_1(%arg0: i32) -> (i32, i32, i32) {
    %c0_i32 = arith.constant 0 : i32
    %c0_i32_0 = arith.constant 0 : i32
    %c0_i32_1 = arith.constant 0 : i32
    %c0_i32_2 = arith.constant 0 : i32
    return %c0_i32, %c0_i32_0, %c0_i32_1 : i32, i32, i32
  }
  func.func @transform_2(%arg0: i32) -> (i32, i32) {
    %c0_i32 = arith.constant 0 : i32
    %c0_i32_0 = arith.constant 0 : i32
    %c0_i32_1 = arith.constant 0 : i32
    return %c0_i32, %c0_i32_0 : i32, i32
  }
  func.func @transform_3(%arg0: i32) -> (i32, i32, i32) {
    %c0_i32 = arith.constant 0 : i32
    %c0_i32_0 = arith.constant 0 : i32
    %c0_i32_1 = arith.constant 0 : i32
    %c0_i32_2 = arith.constant 0 : i32
    return %c0_i32, %c0_i32_0, %c0_i32_1 : i32, i32, i32
  }
  func.func @transform_4(%arg0: i32) -> (i32, i32, i32) {
    %c0_i32 = arith.constant 0 : i32
    %c0_i32_0 = arith.constant 0 : i32
    %c0_i32_1 = arith.constant 0 : i32
    %c0_i32_2 = arith.constant 0 : i32
    return %c0_i32, %c0_i32_0, %c0_i32_1 : i32, i32, i32
  }
  func.func @transform_5(%arg0: i32) -> (i32, i32) {
    %c0_i32 = arith.constant 0 : i32
    %c0_i32_0 = arith.constant 0 : i32
    %c0_i32_1 = arith.constant 0 : i32
    return %c0_i32, %c0_i32_0 : i32, i32
  }
  func.func @transform_6(%arg0: i32) -> (i32, i32, i32) {
    %c0_i32 = arith.constant 0 : i32
    %c0_i32_0 = arith.constant 0 : i32
    %c0_i32_1 = arith.constant 0 : i32
    return %arg0, %c0_i32, %c0_i32_0 : i32, i32, i32
  }
  func.func @transform_7(%arg0: i32) -> (i32, i32, i32) {
    %c0_i32 = arith.constant 0 : i32
    %c0_i32_0 = arith.constant 0 : i32
    %c0_i32_1 = arith.constant 0 : i32
    return %arg0, %c0_i32, %c0_i32_0 : i32, i32, i32
  }
  func.func @transform_8(%arg0: i32) -> (i32, i32, i32) {
    %c0_i32 = arith.constant 0 : i32
    %c0_i32_0 = arith.constant 0 : i32
    %c0_i32_1 = arith.constant 0 : i32
    return %arg0, %c0_i32, %c0_i32_0 : i32, i32, i32
  }
}

module attributes {stable_mosaic.version = 11 : i64} {
  func.func @_stage_kernel(%arg0: i32, %arg1: memref<1x8x32xf32, #tpu.memory_space<vmem>>, %arg2: memref<1x32xf32, #tpu.memory_space<vmem>>, %arg3: memref<1x32xf32, #tpu.memory_space<vmem>>, %arg4: memref<2x32x72xf32, #tpu.memory_space<vmem>>, %arg5: memref<1x72xf32, #tpu.memory_space<vmem>>, %arg6: memref<2x18x8xf32, #tpu.memory_space<vmem>>, %arg7: memref<3x72x64xf32, #tpu.memory_space<vmem>>, %arg8: memref<64x4xf32, #tpu.memory_space<vmem>>, %arg9: memref<1x16x64xf32, #tpu.memory_space<vmem>>, %arg10: memref<1x1x4xf32, #tpu.memory_space<vmem>>, %arg11: memref<1x1x4xf32, #tpu.memory_space<vmem>>) attributes {dimension_semantics = [#tpu.dimension_semantics<parallel>], iteration_bounds = array<i64: 2>, scalar_prefetch = 0 : i64, scratch_operands = 0 : i64, tpu.core_type = #tpu.core_type<tc>, window_params = [{transform_indices = @transform_0, window_bounds = array<i64: 1, 8, 32>}, {pipeline_mode = #tpu.pipeline_mode<synchronous>, transform_indices = @transform_1, window_bounds = array<i64: 1, 32>}, {pipeline_mode = #tpu.pipeline_mode<synchronous>, transform_indices = @transform_2, window_bounds = array<i64: 1, 32>}, {pipeline_mode = #tpu.pipeline_mode<synchronous>, transform_indices = @transform_3, window_bounds = array<i64: 2, 32, 72>}, {pipeline_mode = #tpu.pipeline_mode<synchronous>, transform_indices = @transform_4, window_bounds = array<i64: 1, 72>}, {pipeline_mode = #tpu.pipeline_mode<synchronous>, transform_indices = @transform_5, window_bounds = array<i64: 2, 18, 8>}, {pipeline_mode = #tpu.pipeline_mode<synchronous>, transform_indices = @transform_6, window_bounds = array<i64: 3, 72, 64>}, {pipeline_mode = #tpu.pipeline_mode<synchronous>, transform_indices = @transform_7, window_bounds = array<i64: 64, 4>}, {transform_indices = @transform_8, window_bounds = array<i64: 1, 16, 64>}, {transform_indices = @transform_9, window_bounds = array<i64: 1, 1, 4>}, {transform_indices = @transform_10, window_bounds = array<i64: 1, 1, 4>}]} {
    %c0 = arith.constant 0 : index
    %c0_0 = arith.constant 0 : index
    %c0_1 = arith.constant 0 : index
    %0 = vector.load %arg1[%c0, %c0_0, %c0_1] : memref<1x8x32xf32, #tpu.memory_space<vmem>>, vector<1x8x32xf32>
    %1 = vector.shape_cast %0 : vector<1x8x32xf32> to vector<8x32xf32>
    %c0_2 = arith.constant 0 : index
    %c0_3 = arith.constant 0 : index
    %2 = vector.load %arg2[%c0_2, %c0_3] : memref<1x32xf32, #tpu.memory_space<vmem>>, vector<1x32xf32>
    %3 = vector.broadcast %2 : vector<1x32xf32> to vector<8x32xf32>
    %4 = arith.mulf %1, %3 : vector<8x32xf32>
    %c0_4 = arith.constant 0 : index
    %c0_5 = arith.constant 0 : index
    %5 = vector.load %arg3[%c0_4, %c0_5] : memref<1x32xf32, #tpu.memory_space<vmem>>, vector<1x32xf32>
    %6 = vector.broadcast %5 : vector<1x32xf32> to vector<8x32xf32>
    %7 = arith.addf %4, %6 : vector<8x32xf32>
    %cst = arith.constant 0.000000e+00 : f32
    %8 = vector.broadcast %cst : f32 to vector<8x32xf32>
    %9 = arith.maximumf %7, %8 : vector<8x32xf32>
    %cst_6 = arith.constant 0.000000e+00 : f32
    %10 = vector.broadcast %cst_6 : f32 to vector<18x72xf32>
    %c0_7 = arith.constant 0 : index
    %c0_8 = arith.constant 0 : index
    %c0_9 = arith.constant 0 : index
    %11 = vector.load %arg4[%c0_7, %c0_8, %c0_9] : memref<2x32x72xf32, #tpu.memory_space<vmem>>, vector<1x32x72xf32>
    %12 = vector.shape_cast %11 : vector<1x32x72xf32> to vector<32x72xf32>
    %cst_10 = arith.constant dense<0.000000e+00> : vector<8x72xf32>
    %13 = tpu.matmul %9, %12, %cst_10 {dimension_numbers = #tpu.dot_dimension_numbers<[1], [0], [0], [1], [0, 0, 1, 1], [], []>} : vector<8x32xf32>, vector<32x72xf32>, vector<8x72xf32> -> vector<8x72xf32>
    %c0_11 = arith.constant 0 : index
    %c0_12 = arith.constant 0 : index
    %14 = vector.load %arg5[%c0_11, %c0_12] : memref<1x72xf32, #tpu.memory_space<vmem>>, vector<1x72xf32>
    %15 = vector.broadcast %14 : vector<1x72xf32> to vector<8x72xf32>
    %16 = arith.addf %13, %15 : vector<8x72xf32>
    %c0_13 = arith.constant 0 : index
    %c0_14 = arith.constant 0 : index
    %c0_15 = arith.constant 0 : index
    %17 = vector.load %arg6[%c0_13, %c0_14, %c0_15] : memref<2x18x8xf32, #tpu.memory_space<vmem>>, vector<1x18x8xf32>
    %18 = vector.shape_cast %17 : vector<1x18x8xf32> to vector<18x8xf32>
    %cst_16 = arith.constant dense<0.000000e+00> : vector<18x72xf32>
    %19 = tpu.matmul %18, %16, %cst_16 {dimension_numbers = #tpu.dot_dimension_numbers<[1], [0], [0], [1], [0, 0, 1, 1], [], []>} : vector<18x8xf32>, vector<8x72xf32>, vector<18x72xf32> -> vector<18x72xf32>
    %20 = arith.addf %10, %19 : vector<18x72xf32>
    %c1 = arith.constant 1 : index
    %c0_17 = arith.constant 0 : index
    %c0_18 = arith.constant 0 : index
    %21 = vector.load %arg4[%c1, %c0_17, %c0_18] : memref<2x32x72xf32, #tpu.memory_space<vmem>>, vector<1x32x72xf32>
    %22 = vector.shape_cast %21 : vector<1x32x72xf32> to vector<32x72xf32>
    %cst_19 = arith.constant dense<0.000000e+00> : vector<8x72xf32>
    %23 = tpu.matmul %9, %22, %cst_19 {dimension_numbers = #tpu.dot_dimension_numbers<[1], [0], [0], [1], [0, 0, 1, 1], [], []>} : vector<8x32xf32>, vector<32x72xf32>, vector<8x72xf32> -> vector<8x72xf32>
    %c0_20 = arith.constant 0 : index
    %c0_21 = arith.constant 0 : index
    %24 = vector.load %arg5[%c0_20, %c0_21] : memref<1x72xf32, #tpu.memory_space<vmem>>, vector<1x72xf32>
    %25 = vector.broadcast %24 : vector<1x72xf32> to vector<8x72xf32>
    %26 = arith.addf %23, %25 : vector<8x72xf32>
    %c1_22 = arith.constant 1 : index
    %c0_23 = arith.constant 0 : index
    %c0_24 = arith.constant 0 : index
    %27 = vector.load %arg6[%c1_22, %c0_23, %c0_24] : memref<2x18x8xf32, #tpu.memory_space<vmem>>, vector<1x18x8xf32>
    %28 = vector.shape_cast %27 : vector<1x18x8xf32> to vector<18x8xf32>
    %cst_25 = arith.constant dense<0.000000e+00> : vector<18x72xf32>
    %29 = tpu.matmul %28, %26, %cst_25 {dimension_numbers = #tpu.dot_dimension_numbers<[1], [0], [0], [1], [0, 0, 1, 1], [], []>} : vector<18x8xf32>, vector<8x72xf32>, vector<18x72xf32> -> vector<18x72xf32>
    %30 = arith.addf %20, %29 : vector<18x72xf32>
    %cst_26 = arith.constant 0.000000e+00 : f32
    %31 = vector.broadcast %cst_26 : f32 to vector<16x64xf32>
    %32 = vector.extract_strided_slice %30 {offsets = [0, 0], sizes = [16, 72], strides = [1, 1]} : vector<18x72xf32> to vector<16x72xf32>
    %c0_27 = arith.constant 0 : index
    %c0_28 = arith.constant 0 : index
    %c0_29 = arith.constant 0 : index
    %33 = vector.load %arg7[%c0_27, %c0_28, %c0_29] : memref<3x72x64xf32, #tpu.memory_space<vmem>>, vector<1x72x64xf32>
    %34 = vector.shape_cast %33 : vector<1x72x64xf32> to vector<72x64xf32>
    %cst_30 = arith.constant dense<0.000000e+00> : vector<16x64xf32>
    %35 = tpu.matmul %32, %34, %cst_30 {dimension_numbers = #tpu.dot_dimension_numbers<[1], [0], [0], [1], [0, 0, 1, 1], [], []>} : vector<16x72xf32>, vector<72x64xf32>, vector<16x64xf32> -> vector<16x64xf32>
    %36 = arith.addf %31, %35 : vector<16x64xf32>
    %37 = vector.extract_strided_slice %30 {offsets = [1, 0], sizes = [16, 72], strides = [1, 1]} : vector<18x72xf32> to vector<16x72xf32>
    %c1_31 = arith.constant 1 : index
    %c0_32 = arith.constant 0 : index
    %c0_33 = arith.constant 0 : index
    %38 = vector.load %arg7[%c1_31, %c0_32, %c0_33] : memref<3x72x64xf32, #tpu.memory_space<vmem>>, vector<1x72x64xf32>
    %39 = vector.shape_cast %38 : vector<1x72x64xf32> to vector<72x64xf32>
    %cst_34 = arith.constant dense<0.000000e+00> : vector<16x64xf32>
    %40 = tpu.matmul %37, %39, %cst_34 {dimension_numbers = #tpu.dot_dimension_numbers<[1], [0], [0], [1], [0, 0, 1, 1], [], []>} : vector<16x72xf32>, vector<72x64xf32>, vector<16x64xf32> -> vector<16x64xf32>
    %41 = arith.addf %36, %40 : vector<16x64xf32>
    %42 = vector.extract_strided_slice %30 {offsets = [2, 0], sizes = [16, 72], strides = [1, 1]} : vector<18x72xf32> to vector<16x72xf32>
    %c2 = arith.constant 2 : index
    %c0_35 = arith.constant 0 : index
    %c0_36 = arith.constant 0 : index
    %43 = vector.load %arg7[%c2, %c0_35, %c0_36] : memref<3x72x64xf32, #tpu.memory_space<vmem>>, vector<1x72x64xf32>
    %44 = vector.shape_cast %43 : vector<1x72x64xf32> to vector<72x64xf32>
    %cst_37 = arith.constant dense<0.000000e+00> : vector<16x64xf32>
    %45 = tpu.matmul %42, %44, %cst_37 {dimension_numbers = #tpu.dot_dimension_numbers<[1], [0], [0], [1], [0, 0, 1, 1], [], []>} : vector<16x72xf32>, vector<72x64xf32>, vector<16x64xf32> -> vector<16x64xf32>
    %46 = arith.addf %41, %45 : vector<16x64xf32>
    %cst_38 = arith.constant dense<0.000000e+00> : vector<64xf32>
    %47 = vector.multi_reduction <add>, %46, %cst_38 [0] : vector<16x64xf32> to vector<64xf32>
    %48 = vector.shape_cast %47 : vector<64xf32> to vector<1x64xf32>
    %49 = arith.mulf %46, %46 : vector<16x64xf32>
    %cst_39 = arith.constant dense<0.000000e+00> : vector<64xf32>
    %50 = vector.multi_reduction <add>, %49, %cst_39 [0] : vector<16x64xf32> to vector<64xf32>
    %51 = vector.shape_cast %50 : vector<64xf32> to vector<1x64xf32>
    %c0_40 = arith.constant 0 : index
    %c0_41 = arith.constant 0 : index
    %52 = vector.load %arg8[%c0_40, %c0_41] : memref<64x4xf32, #tpu.memory_space<vmem>>, vector<64x4xf32>
    %cst_42 = arith.constant dense<0.000000e+00> : vector<1x4xf32>
    %53 = tpu.matmul %48, %52, %cst_42 {dimension_numbers = #tpu.dot_dimension_numbers<[1], [0], [0], [1], [0, 0, 1, 1], [], []>} : vector<1x64xf32>, vector<64x4xf32>, vector<1x4xf32> -> vector<1x4xf32>
    %54 = vector.shape_cast %53 : vector<1x4xf32> to vector<1x1x4xf32>
    %c0_43 = arith.constant 0 : index
    %c0_44 = arith.constant 0 : index
    %c0_45 = arith.constant 0 : index
    %55 = vector.load %arg10[%c0_43, %c0_44, %c0_45] : memref<1x1x4xf32, #tpu.memory_space<vmem>>, vector<1x1x4xf32>
    tpu.vector_store %arg10[%c0_43, %c0_44, %c0_45], %54 {strides = array<i32>} : memref<1x1x4xf32, #tpu.memory_space<vmem>>, vector<1x1x4xf32>,
    %c0_46 = arith.constant 0 : index
    %c0_47 = arith.constant 0 : index
    %56 = vector.load %arg8[%c0_46, %c0_47] : memref<64x4xf32, #tpu.memory_space<vmem>>, vector<64x4xf32>
    %cst_48 = arith.constant dense<0.000000e+00> : vector<1x4xf32>
    %57 = tpu.matmul %51, %56, %cst_48 {dimension_numbers = #tpu.dot_dimension_numbers<[1], [0], [0], [1], [0, 0, 1, 1], [], []>} : vector<1x64xf32>, vector<64x4xf32>, vector<1x4xf32> -> vector<1x4xf32>
    %58 = vector.shape_cast %57 : vector<1x4xf32> to vector<1x1x4xf32>
    %c0_49 = arith.constant 0 : index
    %c0_50 = arith.constant 0 : index
    %c0_51 = arith.constant 0 : index
    %59 = vector.load %arg11[%c0_49, %c0_50, %c0_51] : memref<1x1x4xf32, #tpu.memory_space<vmem>>, vector<1x1x4xf32>
    tpu.vector_store %arg11[%c0_49, %c0_50, %c0_51], %58 {strides = array<i32>} : memref<1x1x4xf32, #tpu.memory_space<vmem>>, vector<1x1x4xf32>,
    %60 = vector.shape_cast %46 : vector<16x64xf32> to vector<1x16x64xf32>
    %c0_52 = arith.constant 0 : index
    %c0_53 = arith.constant 0 : index
    %c0_54 = arith.constant 0 : index
    %61 = vector.load %arg9[%c0_52, %c0_53, %c0_54] : memref<1x16x64xf32, #tpu.memory_space<vmem>>, vector<1x16x64xf32>
    tpu.vector_store %arg9[%c0_52, %c0_53, %c0_54], %60 {strides = array<i32>} : memref<1x16x64xf32, #tpu.memory_space<vmem>>, vector<1x16x64xf32>,
    return
  }
  func.func @transform_0(%arg0: i32) -> (i32, i32, i32) {
    %c0_i32 = arith.constant 0 : i32
    %c0_i32_0 = arith.constant 0 : i32
    %c0_i32_1 = arith.constant 0 : i32
    return %arg0, %c0_i32, %c0_i32_0 : i32, i32, i32
  }
  func.func @transform_1(%arg0: i32) -> (i32, i32) {
    %c0_i32 = arith.constant 0 : i32
    %c0_i32_0 = arith.constant 0 : i32
    %c0_i32_1 = arith.constant 0 : i32
    return %c0_i32, %c0_i32_0 : i32, i32
  }
  func.func @transform_2(%arg0: i32) -> (i32, i32) {
    %c0_i32 = arith.constant 0 : i32
    %c0_i32_0 = arith.constant 0 : i32
    %c0_i32_1 = arith.constant 0 : i32
    return %c0_i32, %c0_i32_0 : i32, i32
  }
  func.func @transform_3(%arg0: i32) -> (i32, i32, i32) {
    %c0_i32 = arith.constant 0 : i32
    %c0_i32_0 = arith.constant 0 : i32
    %c0_i32_1 = arith.constant 0 : i32
    %c0_i32_2 = arith.constant 0 : i32
    return %c0_i32, %c0_i32_0, %c0_i32_1 : i32, i32, i32
  }
  func.func @transform_4(%arg0: i32) -> (i32, i32) {
    %c0_i32 = arith.constant 0 : i32
    %c0_i32_0 = arith.constant 0 : i32
    %c0_i32_1 = arith.constant 0 : i32
    return %c0_i32, %c0_i32_0 : i32, i32
  }
  func.func @transform_5(%arg0: i32) -> (i32, i32, i32) {
    %c0_i32 = arith.constant 0 : i32
    %c0_i32_0 = arith.constant 0 : i32
    %c0_i32_1 = arith.constant 0 : i32
    %c0_i32_2 = arith.constant 0 : i32
    return %c0_i32, %c0_i32_0, %c0_i32_1 : i32, i32, i32
  }
  func.func @transform_6(%arg0: i32) -> (i32, i32, i32) {
    %c0_i32 = arith.constant 0 : i32
    %c0_i32_0 = arith.constant 0 : i32
    %c0_i32_1 = arith.constant 0 : i32
    %c0_i32_2 = arith.constant 0 : i32
    return %c0_i32, %c0_i32_0, %c0_i32_1 : i32, i32, i32
  }
  func.func @transform_7(%arg0: i32) -> (i32, i32) {
    %c0_i32 = arith.constant 0 : i32
    %c0_i32_0 = arith.constant 0 : i32
    %c0_i32_1 = arith.constant 0 : i32
    return %c0_i32, %c0_i32_0 : i32, i32
  }
  func.func @transform_8(%arg0: i32) -> (i32, i32, i32) {
    %c0_i32 = arith.constant 0 : i32
    %c0_i32_0 = arith.constant 0 : i32
    %c0_i32_1 = arith.constant 0 : i32
    return %arg0, %c0_i32, %c0_i32_0 : i32, i32, i32
  }
  func.func @transform_9(%arg0: i32) -> (i32, i32, i32) {
    %c0_i32 = arith.constant 0 : i32
    %c0_i32_0 = arith.constant 0 : i32
    %c0_i32_1 = arith.constant 0 : i32
    return %arg0, %c0_i32, %c0_i32_0 : i32, i32, i32
  }
  func.func @transform_10(%arg0: i32) -> (i32, i32, i32) {
    %c0_i32 = arith.constant 0 : i32
    %c0_i32_0 = arith.constant 0 : i32
    %c0_i32_1 = arith.constant 0 : i32
    return %arg0, %c0_i32, %c0_i32_0 : i32, i32, i32
  }
}

module attributes {stable_mosaic.version = 11 : i64} {
  func.func @_finalize_kernel(%arg0: i32, %arg1: memref<1x16x64xf32, #tpu.memory_space<vmem>>, %arg2: memref<1x64xf32, #tpu.memory_space<vmem>>, %arg3: memref<1x64xf32, #tpu.memory_space<vmem>>, %arg4: memref<4x64x16xf32, #tpu.memory_space<vmem>>, %arg5: memref<1x4x16x16xf32, #tpu.memory_space<vmem>>) attributes {dimension_semantics = [#tpu.dimension_semantics<parallel>], iteration_bounds = array<i64: 2>, scalar_prefetch = 0 : i64, scratch_operands = 0 : i64, tpu.core_type = #tpu.core_type<tc>, window_params = [{transform_indices = @transform_0, window_bounds = array<i64: 1, 16, 64>}, {pipeline_mode = #tpu.pipeline_mode<synchronous>, transform_indices = @transform_1, window_bounds = array<i64: 1, 64>}, {pipeline_mode = #tpu.pipeline_mode<synchronous>, transform_indices = @transform_2, window_bounds = array<i64: 1, 64>}, {pipeline_mode = #tpu.pipeline_mode<synchronous>, transform_indices = @transform_3, window_bounds = array<i64: 4, 64, 16>}, {transform_indices = @transform_4, window_bounds = array<i64: 1, 4, 16, 16>}]} {
    %c0 = arith.constant 0 : index
    %c0_0 = arith.constant 0 : index
    %c0_1 = arith.constant 0 : index
    %0 = vector.load %arg1[%c0, %c0_0, %c0_1] : memref<1x16x64xf32, #tpu.memory_space<vmem>>, vector<1x16x64xf32>
    %1 = vector.shape_cast %0 : vector<1x16x64xf32> to vector<16x64xf32>
    %c0_2 = arith.constant 0 : index
    %c0_3 = arith.constant 0 : index
    %2 = vector.load %arg2[%c0_2, %c0_3] : memref<1x64xf32, #tpu.memory_space<vmem>>, vector<1x64xf32>
    %3 = vector.broadcast %2 : vector<1x64xf32> to vector<16x64xf32>
    %4 = arith.mulf %1, %3 : vector<16x64xf32>
    %c0_4 = arith.constant 0 : index
    %c0_5 = arith.constant 0 : index
    %5 = vector.load %arg3[%c0_4, %c0_5] : memref<1x64xf32, #tpu.memory_space<vmem>>, vector<1x64xf32>
    %6 = vector.broadcast %5 : vector<1x64xf32> to vector<16x64xf32>
    %7 = arith.addf %4, %6 : vector<16x64xf32>
    %cst = arith.constant 0.000000e+00 : f32
    %8 = vector.broadcast %cst : f32 to vector<16x64xf32>
    %9 = arith.maximumf %7, %8 : vector<16x64xf32>
    %c0_6 = arith.constant 0 : index
    %c0_7 = arith.constant 0 : index
    %c0_8 = arith.constant 0 : index
    %10 = vector.load %arg4[%c0_6, %c0_7, %c0_8] : memref<4x64x16xf32, #tpu.memory_space<vmem>>, vector<1x64x16xf32>
    %11 = vector.shape_cast %10 : vector<1x64x16xf32> to vector<64x16xf32>
    %cst_9 = arith.constant dense<0.000000e+00> : vector<16x16xf32>
    %12 = tpu.matmul %9, %11, %cst_9 {dimension_numbers = #tpu.dot_dimension_numbers<[1], [0], [0], [1], [0, 0, 1, 1], [], []>} : vector<16x64xf32>, vector<64x16xf32>, vector<16x16xf32> -> vector<16x16xf32>
    %c0_10 = arith.constant 0 : index
    %c0_11 = arith.constant 0 : index
    %c0_12 = arith.constant 0 : index
    %c0_13 = arith.constant 0 : index
    %13 = vector.load %arg5[%c0_10, %c0_11, %c0_12, %c0_13] : memref<1x4x16x16xf32, #tpu.memory_space<vmem>>, vector<1x1x16x16xf32>
    %14 = vector.shape_cast %13 : vector<1x1x16x16xf32> to vector<16x16xf32>
    %15 = vector.shape_cast %12 : vector<16x16xf32> to vector<1x1x16x16xf32>
    tpu.vector_store %arg5[%c0_10, %c0_11, %c0_12, %c0_13], %15 {strides = array<i32>} : memref<1x4x16x16xf32, #tpu.memory_space<vmem>>, vector<1x1x16x16xf32>,
    %c1 = arith.constant 1 : index
    %c0_14 = arith.constant 0 : index
    %c0_15 = arith.constant 0 : index
    %16 = vector.load %arg4[%c1, %c0_14, %c0_15] : memref<4x64x16xf32, #tpu.memory_space<vmem>>, vector<1x64x16xf32>
    %17 = vector.shape_cast %16 : vector<1x64x16xf32> to vector<64x16xf32>
    %cst_16 = arith.constant dense<0.000000e+00> : vector<16x16xf32>
    %18 = tpu.matmul %9, %17, %cst_16 {dimension_numbers = #tpu.dot_dimension_numbers<[1], [0], [0], [1], [0, 0, 1, 1], [], []>} : vector<16x64xf32>, vector<64x16xf32>, vector<16x16xf32> -> vector<16x16xf32>
    %c0_17 = arith.constant 0 : index
    %c1_18 = arith.constant 1 : index
    %c0_19 = arith.constant 0 : index
    %c0_20 = arith.constant 0 : index
    %19 = vector.load %arg5[%c0_17, %c1_18, %c0_19, %c0_20] : memref<1x4x16x16xf32, #tpu.memory_space<vmem>>, vector<1x1x16x16xf32>
    %20 = vector.shape_cast %19 : vector<1x1x16x16xf32> to vector<16x16xf32>
    %21 = vector.shape_cast %18 : vector<16x16xf32> to vector<1x1x16x16xf32>
    tpu.vector_store %arg5[%c0_17, %c1_18, %c0_19, %c0_20], %21 {strides = array<i32>} : memref<1x4x16x16xf32, #tpu.memory_space<vmem>>, vector<1x1x16x16xf32>,
    %c2 = arith.constant 2 : index
    %c0_21 = arith.constant 0 : index
    %c0_22 = arith.constant 0 : index
    %22 = vector.load %arg4[%c2, %c0_21, %c0_22] : memref<4x64x16xf32, #tpu.memory_space<vmem>>, vector<1x64x16xf32>
    %23 = vector.shape_cast %22 : vector<1x64x16xf32> to vector<64x16xf32>
    %cst_23 = arith.constant dense<0.000000e+00> : vector<16x16xf32>
    %24 = tpu.matmul %9, %23, %cst_23 {dimension_numbers = #tpu.dot_dimension_numbers<[1], [0], [0], [1], [0, 0, 1, 1], [], []>} : vector<16x64xf32>, vector<64x16xf32>, vector<16x16xf32> -> vector<16x16xf32>
    %c0_24 = arith.constant 0 : index
    %c2_25 = arith.constant 2 : index
    %c0_26 = arith.constant 0 : index
    %c0_27 = arith.constant 0 : index
    %25 = vector.load %arg5[%c0_24, %c2_25, %c0_26, %c0_27] : memref<1x4x16x16xf32, #tpu.memory_space<vmem>>, vector<1x1x16x16xf32>
    %26 = vector.shape_cast %25 : vector<1x1x16x16xf32> to vector<16x16xf32>
    %27 = vector.shape_cast %24 : vector<16x16xf32> to vector<1x1x16x16xf32>
    tpu.vector_store %arg5[%c0_24, %c2_25, %c0_26, %c0_27], %27 {strides = array<i32>} : memref<1x4x16x16xf32, #tpu.memory_space<vmem>>, vector<1x1x16x16xf32>,
    %c3 = arith.constant 3 : index
    %c0_28 = arith.constant 0 : index
    %c0_29 = arith.constant 0 : index
    %28 = vector.load %arg4[%c3, %c0_28, %c0_29] : memref<4x64x16xf32, #tpu.memory_space<vmem>>, vector<1x64x16xf32>
    %29 = vector.shape_cast %28 : vector<1x64x16xf32> to vector<64x16xf32>
    %cst_30 = arith.constant dense<0.000000e+00> : vector<16x16xf32>
    %30 = tpu.matmul %9, %29, %cst_30 {dimension_numbers = #tpu.dot_dimension_numbers<[1], [0], [0], [1], [0, 0, 1, 1], [], []>} : vector<16x64xf32>, vector<64x16xf32>, vector<16x16xf32> -> vector<16x16xf32>
    %c0_31 = arith.constant 0 : index
    %c3_32 = arith.constant 3 : index
    %c0_33 = arith.constant 0 : index
    %c0_34 = arith.constant 0 : index
    %31 = vector.load %arg5[%c0_31, %c3_32, %c0_33, %c0_34] : memref<1x4x16x16xf32, #tpu.memory_space<vmem>>, vector<1x1x16x16xf32>
    %32 = vector.shape_cast %31 : vector<1x1x16x16xf32> to vector<16x16xf32>
    %33 = vector.shape_cast %30 : vector<16x16xf32> to vector<1x1x16x16xf32>
    tpu.vector_store %arg5[%c0_31, %c3_32, %c0_33, %c0_34], %33 {strides = array<i32>} : memref<1x4x16x16xf32, #tpu.memory_space<vmem>>, vector<1x1x16x16xf32>,
    return
  }
  func.func @transform_0(%arg0: i32) -> (i32, i32, i32) {
    %c0_i32 = arith.constant 0 : i32
    %c0_i32_0 = arith.constant 0 : i32
    %c0_i32_1 = arith.constant 0 : i32
    return %arg0, %c0_i32, %c0_i32_0 : i32, i32, i32
  }
  func.func @transform_1(%arg0: i32) -> (i32, i32) {
    %c0_i32 = arith.constant 0 : i32
    %c0_i32_0 = arith.constant 0 : i32
    %c0_i32_1 = arith.constant 0 : i32
    return %c0_i32, %c0_i32_0 : i32, i32
  }
  func.func @transform_2(%arg0: i32) -> (i32, i32) {
    %c0_i32 = arith.constant 0 : i32
    %c0_i32_0 = arith.constant 0 : i32
    %c0_i32_1 = arith.constant 0 : i32
    return %c0_i32, %c0_i32_0 : i32, i32
  }
  func.func @transform_3(%arg0: i32) -> (i32, i32, i32) {
    %c0_i32 = arith.constant 0 : i32
    %c0_i32_0 = arith.constant 0 : i32
    %c0_i32_1 = arith.constant 0 : i32
    %c0_i32_2 = arith.constant 0 : i32
    return %c0_i32, %c0_i32_0, %c0_i32_1 : i32, i32, i32
  }
  func.func @transform_4(%arg0: i32) -> (i32, i32, i32, i32) {
    %c0_i32 = arith.constant 0 : i32
    %c0_i32_0 = arith.constant 0 : i32
    %c0_i32_1 = arith.constant 0 : i32
    %c0_i32_2 = arith.constant 0 : i32
    return %arg0, %c0_i32, %c0_i32_0, %c0_i32_1 : i32, i32, i32, i32
  }
}

</mosaic_0001>

<bundles_post_ra>
// kernel: tile.33
= control target key start
LH: loop header
LB: loop body
LE: loop exit
PB: predicated region body
PF: predicated region fallthrough
CT: control target
= control target key end

     0   :  { %s22_s0 = inlined_call_operand.vmem [shape: f32[4], index: 0, kind: input, shape index: {}]   ;;  %s23_s1 = inlined_call_operand.vmem [shape: f32[8,4], index: 1, kind: output, shape index: {}]  }
   0x1   :  { %v4_v0 = vld [vmem:[%s22_s0] ss:$0 sm:$0xff] }
   0x2   :  { %5 = vst [vmem:[%s23_s1] sm:$0xff] %v4_v0 }

// kernel: tile.34
= control target key start
LH: loop header
LB: loop body
LE: loop exit
PB: predicated region body
PF: predicated region fallthrough
CT: control target
= control target key end

     0   :  { %s67_s10 = smov 28   ;;  %s68_s11 = smov 20   ;;  %vm3_vm0 = vcmask 31744   ;;  %vm9_vm1 = vcmask 261344   ;;  %vm15_vm2 = vcmask 228544   ;;  %vm21_vm3 = vcmask 195744   ;;  %s111_s0 = inlined_call_operand.vmem [shape: f32[8,4], index: 0, kind: input, shape index: {}]   ;;  %s112_s1 = inlined_call_operand.vmem [shape: f32[1,32], index: 1, kind: output, shape index: {}]  }
   0x1   :  { %v53_v0 = vld [vmem:[%s111_s0 + $0x7] sm:$0x1]   ;;  %v55_v1 = vld [vmem:[%s111_s0 + $0x5] sm:$0x1]   ;;  %v57_v2 = vld [vmem:[%s111_s0 + $0x3] sm:$0x1]  }
   0x2   :  { %7 = vrot.lane.b32.xlu0 %v53_v0, %s67_s10  ;;  %19 = vrot.lane.b32.xlu1 %v55_v1, %s68_s11  ;;  %s69_s14 = smov 12   ;;  %v54_v3 = vld [vmem:[%s111_s0 + $0x6] sm:$0x1]   ;;  %v56_v4 = vld [vmem:[%s111_s0 + $0x4] sm:$0x1]   ;;  %s70_s21 = smov 24  }
   0x3   :  { %31 = vrot.lane.b32.xlu2 %v57_v2, %s69_s14  ;;  %v58_v5 = vld [vmem:[%s111_s0 + $0x2] sm:$0x1]   ;;  %s71_s22 = smov 16   ;;  %s72_s23 = smov 8   ;;  %v59_v6 = vld [vmem:[%s111_s0 + $0x1] sm:$0x1]  }
   0x4   :  { %s73_s26 = smov 4   ;;  %v2_v7 = vld [vmem:[%s111_s0] sm:$0x1]   ;;  %vm27_vm4 = vcmask 162944   ;;  %vm33_vm5 = vcmask 130144   ;;  %vm39_vm6 = vcmask 97344  }
   0x5   :  { %4 = vst.msk [vmem:[#allocation0] sm:$0x1] %vm3_vm0, %v2_v7   ;;  %vm45_vm7 = vcmask 64544  }
   0xa   :  { %13 = vrot.lane.b32.xlu0 %v54_v3, %s70_s21  ;;  %25 = vrot.lane.b32.xlu1 %v56_v4, %s71_s22 }
   0xb   :  { %37 = vrot.lane.b32.xlu2 %v58_v5, %s72_s23 }
  0x12   :  { %43 = vrot.lane.b32.xlu0 %v59_v6, %s73_s26 }
  0x5d   :  { %v32_v8 = vpop.permute.xlu2 %31  }
  0x65   :  { %v38_v9 = vpop.permute.xlu2 %37  }
  0x74   :  { %v8_v10 = vpop.permute.xlu0 %7   ;;  %v20_v11 = vpop.permute.xlu1 %19  }
  0x75   :  { %10 = vst.msk [vmem:[#allocation0] sm:$0x1] %vm9_vm1, %v8_v10  }
  0x7c   :  { %v14_v12 = vpop.permute.xlu0 %13   ;;  %v26_v13 = vpop.permute.xlu1 %25  }
  0x7d   :  { %16 = vst.msk [vmem:[#allocation0] sm:$0x1] %vm15_vm2, %v14_v12  }
  0x7e   :  { %22 = vst.msk [vmem:[#allocation0] sm:$0x1] %vm21_vm3, %v20_v11  }
  0x7f   :  { %28 = vst.msk [vmem:[#allocation0] sm:$0x1] %vm27_vm4, %v26_v13  }
  0x80   :  { %34 = vst.msk [vmem:[#allocation0] sm:$0x1] %vm33_vm5, %v32_v8  }
  0x81   :  { %40 = vst.msk [vmem:[#allocation0] sm:$0x1] %vm39_vm6, %v38_v9  }
  0x84   :  { %v44_v14 = vpop.permute.xlu0 %43  }
  0x85   :  { %46 = vst.msk [vmem:[#allocation0] sm:$0x1] %vm45_vm7, %v44_v14  }
  0x8c   :  { %v49_v15 = vld [vmem:[#allocation0] sm:$0x1] }
  0x8d   :  { %52 = vst [vmem:[%s112_s1] sm:$0x1] %v49_v15 }

// kernel: reconstruct1_forward.3
= control target key start
LH: loop header
LB: loop body
LE: loop exit
PB: predicated region body
PF: predicated region fallthrough
CT: control target
= control target key end

     0   :  { %s813_s27 = smov 0   ;;  %s931_s0 = inlined_call_operand.vmem [shape: f32[2,4,16], index: 0, kind: input, shape index: {}]   ;;  %s932_s1 = inlined_call_operand.vmem [shape: f32[2,16,40], index: 1, kind: input, shape index: {}]   ;;  %s933_s2 = inlined_call_operand.vmem [shape: f32[1,40], index: 2, kind: input, shape index: {}]   ;;  %s934_s3 = inlined_call_operand.vmem [shape: f32[2,10,4], index: 3, kind: input, shape index: {}]   ;;  %s935_s4 = inlined_call_operand.vmem [shape: f32[3,40,32], index: 4, kind: input, shape index: {}]   ;;  %s936_s5 = inlined_call_operand.vmem [shape: f32[32,4], index: 5, kind: input, shape index: {}]   ;;  %s937_s6 = inlined_call_operand.vmem [shape: f32[2,8,32], index: 6, kind: output, shape index: {0}]   ;;  %s938_s7 = inlined_call_operand.vmem [shape: f32[2,1,4], index: 7, kind: output, shape index: {1}]   ;;  %s939_s8 = inlined_call_operand.vmem [shape: f32[2,1,4], index: 8, kind: output, shape index: {2}]  }
   0x1 LB: > { %s715_s28 = sadd.s32 4294967295, %s766_s27   ;;  %p719_p0 = scmp.ge.s32.totalorder %s766_s27, 1  ;;  %s766_s27 = sphi %s813_s27, %s19_s27  }
   0x2   : > { %p266_p1 = scmp.lt.s32.totalorder %s766_s27, 3 }
   0x4   : > { %p267_p2 = pnand %p719_p0, %p266_p1 }
   0x5   : > { %p304_p3 = scmp.lt.s32.totalorder (!%p267_p2), %s715_s28, 1 }
   0x6   : > { %270 = sbr.rel (%p267_p2) target bundleno = 569 (0x239), region = 44 }
   0xb   : > { %v320_v0 = vld [vmem:[%s932_s1 + $0x8] sm:$0xff]  ;;  %v724_v1 = vld [vmem:[%s932_s1 + $0x18] sm:$0xff]  ;;  %v319_v2 = vld [vmem:[%s932_s1] sm:$0xff]  ;;  %s941_s28 = smov (!%p304_p3, %s715_s28), 1  ;;  %vm325_vm0 = vcmask 130048   ;;  %vm384_vm1 = vcmask 1043456  }
   0xc   : > { %343 = vmatpush.msra.mxu0 %v320_v0  ;;  %368 = vmatpush.msra.mxu1 %v724_v1  ;;  %v723_v3 = vld [vmem:[%s932_s1 + $0x10] sm:$0xff]  ;;  %s720_s15 = sshll.u32 %s941_s28, 2  ;;  %v447_v5 = vld [vmem:[%s935_s4 + $0x20] sm:$0xff]  ;;  %v446_v6 = vld [vmem:[%s935_s4 + $0x18] sm:$0xff]  ;;  %vm377_vm2 = vcmask 31744   ;;  %vm460_vm3 = vcmask 326656   ;;  %s317_s13 = scalar_lea.vmem %s939_s8, %s941_s28 }
   0xd   : > { %s307_s18 = scalar_lea.vmem %s931_s0, %s720_s15  ;;  %v445_v7 = vld [vmem:[%s935_s4 + $0x10] sm:$0xff]  ;;  %v759_v8 = vld [vmem:[%s933_s2] ss:$0 sm:$0xff]  ;;  %v727_v16 = vld [vmem:[%s934_s3 + $0x18] sm:$0x3]  ;;  %vm456_vm4 = vcmask 1046528   ;;  %s314_s16 = scalar_lea.vmem %s938_s7, %s941_s28 }
   0xe   : > { %344 = vmatpush.msra.mxu0 %v319_v2  ;;  %369 = vmatpush.msra.mxu1 %v723_v3  ;;  %v318_v4 = vld [vmem:[%s307_s18] sm:$0xf]  ;;  %v726_v13 = vld [vmem:[%s934_s3 + $0x10] sm:$0xff]  ;;  %v350_v17 = vld [vmem:[%s934_s3 + $0x8] sm:$0x3]  ;;  %vm511_vm5 = vcmask 1045504  }
   0xf   : > { %722 = vmatmul.msk.f32.vlgmr.msra.gmra.mxu0 %vm325_vm0, %v318_v4  ;;  %725 = vmatmul.msk.f32.vlgmr.msra.gmra.mxu1 %vm325_vm0, %v318_v4  ;;  %v349_v14 = vld [vmem:[%s934_s3] sm:$0xff]  ;;  %v745_v15 = vld [vmem:[%s935_s4 + $0x70] sm:$0xff]  ;;  %v444_v18 = vld [vmem:[%s935_s4 + $0x8] sm:$0xff]  ;;  %s721_s29 = sshll.u32 %s941_s28, 3  ;;  %vm538_vm6 = vcmask 261120   ;;  %vm581_vm7 = vcmask 24576  }
  0x10   : > { %496 = vmatpush.msrb.mxu1 %v447_v5  ;;  %v443_v19 = vld [vmem:[%s935_s4] sm:$0xff]  ;;  %v744_v20 = vld [vmem:[%s935_s4 + $0x68] sm:$0xff]  ;;  %v736_v24 = vld [vmem:[%s935_s4 + $0x38] sm:$0xff]  ;;  %s311_s10 = scalar_lea.vmem %s937_s6, %s721_s29 }
  0x11   : > { %v738_v21 = vld [vmem:[%s935_s4 + $0x48] sm:$0xff]  ;;  %v743_v22 = vld [vmem:[%s935_s4 + $0x60] sm:$0xff]  ;;  %v742_v25 = vld [vmem:[%s935_s4 + $0x58] sm:$0xff] }
  0x12   : > { %497 = vmatpush.msrb.mxu1 %v446_v6  ;;  %474 = vmatpush.msrb.mxu0 %v738_v21  ;;  %v737_v23 = vld [vmem:[%s935_s4 + $0x40] sm:$0xff]  ;;  %v735_v26 = vld [vmem:[%s935_s4 + $0x30] sm:$0xff]  ;;  %v734_v28 = vld [vmem:[%s935_s4 + $0x28] sm:$0xff] }
  0x13   : > { %v741_v27 = vld [vmem:[%s935_s4 + $0x50] sm:$0xff]  ;;  %v557_v41 = vld [vmem:[%s936_s5 + $0x18] sm:$0xff]  ;;  %v555_v43 = vld [vmem:[%s936_s5 + $0x8] sm:$0xff] }
  0x14   : > { %498 = vmatpush.msrb.mxu1 %v445_v7  ;;  %475 = vmatpush.msrb.mxu0 %v737_v23  ;;  %v556_v42 = vld [vmem:[%s936_s5 + $0x10] sm:$0xff]  ;;  %v554_v44 = vld [vmem:[%s936_s5] sm:$0xff] }
  0x16   : > { %499 = vmatpush.msrb.mxu1 %v444_v18  ;;  %476 = vmatpush.msrb.mxu0 %v736_v24 }
  0x18   : > { %500 = vmatpush.msrb.mxu1 %v443_v19  ;;  %477 = vmatpush.msrb.mxu0 %v735_v26 }
  0x1a   : > { %478 = vmatpush.msrb.mxu0 %v734_v28 }
  0x1c   : > { %602 = vmatpush.msra.mxu0 %v557_v41 }
  0x1e   : > { %603 = vmatpush.msra.mxu0 %v556_v42 }
  0x20   : > { %604 = vmatpush.msra.mxu0 %v555_v43 }
  0x22   : > { %605 = vmatpush.msra.mxu0 %v554_v44 }
  0x8c   : > { %v346_v9 = vpop.f32.mrf.mxu0  ;;  %v371_v10 = vpop.f32.mrf.mxu1 }
  0x8d   : > { %v347_v11 = vadd.f32 %v759_v8, %v346_v9  ;;  %v372_v12 = vadd.f32 %v759_v8, %v371_v10 }
  0x8f   : > { %728 = vmatpush.msk.msra.mxu2 %vm384_vm1, %v372_v12  ;;  %731 = vmatpush.msk.msra.mxu3 %vm384_vm1, %v347_v11 }
  0x90   : > { %729 = vmatmul.msk.f32.vlgmr.msra.gmra.mxu2 %vm377_vm2, %v726_v13  ;;  %732 = vmatmul.msk.f32.vlgmr.msra.gmra.mxu3 %vm377_vm2, %v349_v14 }
  0x91   : > { %528 = vmatpush.msrb.mxu2 %v745_v15  ;;  %573 = vmatpush.msrb.mxu3 %v557_v41 }
  0x93   : > { %529 = vmatpush.msrb.mxu2 %v744_v20  ;;  %574 = vmatpush.msrb.mxu3 %v556_v42 }
  0x95   : > { %530 = vmatpush.msrb.mxu2 %v743_v22  ;;  %575 = vmatpush.msrb.mxu3 %v555_v43 }
  0x97   : > { %531 = vmatpush.msrb.mxu2 %v742_v25  ;;  %576 = vmatpush.msrb.mxu3 %v554_v44 }
  0x98   : > { %730 = vmatmul.msk.f32.gmra.mxu2 %vm377_vm2, %v727_v16  ;;  %733 = vmatmul.msk.f32.gmra.mxu3 %vm377_vm2, %v350_v17 }
  0x99   : > { %532 = vmatpush.msrb.mxu2 %v741_v27 }
 0x113   : > { %v405_v29 = vpop.f32.mrf.mxu2  ;;  %v437_v30 = vpop.f32.mrf.mxu3 }
 0x114   : > { %v438_v31 = vadd.f32 %v437_v30, %v405_v29 }
 0x116   : > { %740 = vmatmul.msk.f32.vlgmr.msrb.gmra.mxu1 %vm460_vm3, %v438_v31  ;;  %v457_v35 = vrot.slane %v438_v31, 1  ;;  %v512_v36 = vrot.slane %v438_v31, 2 }
 0x11b   : > { %v408_v32 = vpop.f32.mrf.mxu2  ;;  %v440_v33 = vpop.f32.mrf.mxu3 }
 0x11c   : > { %v441_v34 = vadd.f32 %v440_v33, %v408_v32 }
 0x11e   : > { %v458_v37 = vrot.slane %v441_v34, 1  ;;  %v513_v38 = vrot.slane %v441_v34, 2 }
 0x120   : > { %v459_v39 = vsel %vm456_vm4, %v457_v35, %v458_v37  ;;  %v514_v40 = vsel %vm511_vm5, %v512_v36, %v513_v38 }
 0x121   : > { %739 = vmatmul.msk.f32.vlgmr.msrb.gmra.mxu0 %vm460_vm3, %v459_v39  ;;  %746 = vmatmul.msk.f32.vlgmr.msrb.gmra.mxu2 %vm460_vm3, %v514_v40 }
 0x193   : > { %v502_v46 = vpop.f32.mrf.mxu1 }
 0x19e   : > { %v480_v45 = vpop.f32.mrf.mxu0 }
 0x19f   : > { %v503_v47 = vadd.f32 %v502_v46, %v480_v45 }
 0x1a4   : > { %v534_v48 = vpop.f32.mrf.mxu2 }
 0x1a5   : > { %v537_v49 = vadd.f32 %v534_v48, %v503_v47 }
 0x1a7   : > { %v539_v50 = vsel %vm538_vm6, %v537_v49, 0.0  ;;  %v546_v51 = vmul.f32 %v537_v49, %v537_v49  ;;  %611 = vst.msk [vmem:[%s311_s10] sm:$0xff] %vm538_vm6, %v537_v49 }
 0x1a8   : > { %v540_v52 = vrot.slane %v539_v50, 4 }
 0x1a9   : > { %v547_v53 = vsel %vm538_vm6, %v546_v51, 0.0 }
 0x1aa   : > { %v541_v54 = vadd.f32 %v540_v52, %v539_v50  ;;  %v548_v55 = vrot.slane %v547_v53, 4 }
 0x1ac   : > { %v542_v56 = vrot.slane %v541_v54, 2  ;;  %v549_v57 = vadd.f32 %v548_v55, %v547_v53 }
 0x1ae   : > { %v543_v58 = vadd.f32 %v542_v56, %v541_v54  ;;  %v550_v59 = vrot.slane %v549_v57, 2 }
 0x1b0   : > { %v551_v60 = vadd.f32 %v550_v59, %v549_v57  ;;  %v544_v61 = vrot.slane %v543_v58, 1 }
 0x1b2   : > { %v552_v62 = vrot.slane %v551_v60, 1  ;;  %v545_v63 = vadd.f32 %v544_v61, %v543_v58 }
 0x1b4   : > { %747 = vmatmul.msk.f32.vlgmr.msrb.gmra.mxu3 %vm538_vm6, %v545_v63  ;;  %v553_v0 = vadd.f32 %v552_v62, %v551_v60 }
 0x1b6   : > { %748 = vmatmul.msk.f32.vlgmr.msra.gmra.mxu0 %vm538_vm6, %v553_v0 }
 0x233   : > { %v607_v1 = vpop.f32.mrf.mxu0 }
 0x234   : > { %610 = vst.msk [vmem:[%s317_s13] sm:$0x1] %vm581_vm7, %v607_v1 }
 0x237   : > { %v578_v2 = vpop.f32.mrf.mxu3 }
 0x238   : > { %582 = vst.msk [vmem:[%s314_s16] sm:$0x1] %vm581_vm7, %v578_v2 }
 0x239 PF: > { %s19_s27 = sadd.s32 1, %s766_s27  }
 0x23a   : > { %p16_p4 = scmp.ge.s32.totalorder %s19_s27, 4  }
 0x23c   :  { %18 = sbr.rel (!%p16_p4) target bundleno = 1 (0x1), region = 102 }

// kernel: tile.38
= control target key start
LH: loop header
LB: loop body
LE: loop exit
PB: predicated region body
PF: predicated region fallthrough
CT: control target
= control target key end

     0   :  { %s28_s0 = inlined_call_operand.vmem [shape: f32[4], index: 0, kind: input, shape index: {}]   ;;  %s29_s1 = inlined_call_operand.vmem [shape: f32[16,4], index: 1, kind: output, shape index: {}]  }
   0x1   :  { %v4_v0 = vld [vmem:[%s28_s0] ss:$0 sm:$0xff] }
   0x2   :  { %5 = vst [vmem:[%s29_s1] sm:$0xff] %v4_v0 }
   0x3   :  { %8 = vst [vmem:[%s29_s1 + $0x8] sm:$0xff] %v4_v0 }

// kernel: tile.39
= control target key start
LH: loop header
LB: loop body
LE: loop exit
PB: predicated region body
PF: predicated region fallthrough
CT: control target
= control target key end

     0   :  { %s131_s10 = smov 60   ;;  %s132_s11 = smov 52   ;;  %vm3_vm0 = vcmask 31744   ;;  %vm9_vm1 = vcmask 523744   ;;  %vm15_vm2 = vcmask 490944   ;;  %vm21_vm3 = vcmask 458144   ;;  %s207_s0 = inlined_call_operand.vmem [shape: f32[16,4], index: 0, kind: input, shape index: {}]   ;;  %s208_s1 = inlined_call_operand.vmem [shape: f32[1,64], index: 1, kind: output, shape index: {}]  }
   0x1   :  { %v101_v0 = vld [vmem:[%s207_s0 + $0xf] sm:$0x1]   ;;  %v103_v1 = vld [vmem:[%s207_s0 + $0xd] sm:$0x1]   ;;  %v105_v2 = vld [vmem:[%s207_s0 + $0xb] sm:$0x1]  }
   0x2   :  { %7 = vrot.lane.b32.xlu0 %v101_v0, %s131_s10  ;;  %19 = vrot.lane.b32.xlu1 %v103_v1, %s132_s11  ;;  %s133_s14 = smov 44   ;;  %v102_v3 = vld [vmem:[%s207_s0 + $0xe] sm:$0x1]   ;;  %v104_v4 = vld [vmem:[%s207_s0 + $0xc] sm:$0x1]   ;;  %s134_s19 = smov 56  }
   0x3   :  { %31 = vrot.lane.b32.xlu2 %v105_v2, %s133_s14  ;;  %s135_s20 = smov 48   ;;  %v106_v5 = vld [vmem:[%s207_s0 + $0xa] sm:$0x1]   ;;  %s136_s23 = smov 40   ;;  %v107_v6 = vld [vmem:[%s207_s0 + $0x9] sm:$0x1]  }
   0x4   :  { %v108_v7 = vld [vmem:[%s207_s0 + $0x8] sm:$0x1]   ;;  %s137_s28 = smov 36   ;;  %s138_s29 = smov 32   ;;  %v109_v8 = vld [vmem:[%s207_s0 + $0x7] sm:$0x1]  }
   0x5   :  { %s139_s3 = smov 28   ;;  %v110_v9 = vld [vmem:[%s207_s0 + $0x6] sm:$0x1]   ;;  %v111_v10 = vld [vmem:[%s207_s0 + $0x5] sm:$0x1]   ;;  %s140_s8 = smov 24  }
   0x6   :  { %s141_s9 = smov 20   ;;  %v112_v11 = vld [vmem:[%s207_s0 + $0x4] sm:$0x1]   ;;  %s142_s12 = smov 16   ;;  %v113_v12 = vld [vmem:[%s207_s0 + $0x3] sm:$0x1]  }
   0x7   :  { %v114_v13 = vld [vmem:[%s207_s0 + $0x2] sm:$0x1]   ;;  %s143_s17 = smov 12   ;;  %s144_s18 = smov 8   ;;  %v115_v14 = vld [vmem:[%s207_s0 + $0x1] sm:$0x1]  }
   0x8   :  { %s145_s21 = smov 4   ;;  %v2_v15 = vld [vmem:[%s207_s0] sm:$0x1]   ;;  %vm27_vm4 = vcmask 425344   ;;  %vm33_vm5 = vcmask 392544   ;;  %vm39_vm6 = vcmask 359744  }
   0x9   :  { %4 = vst.msk [vmem:[#allocation0] sm:$0x1] %vm3_vm0, %v2_v15   ;;  %vm45_vm7 = vcmask 326944   ;;  %vm51_vm8 = vcmask 294144   ;;  %vm57_vm9 = vcmask 261344   ;;  %vm63_vm10 = vcmask 228544  }
   0xa   :  { %13 = vrot.lane.b32.xlu0 %v102_v3, %s134_s19  ;;  %25 = vrot.lane.b32.xlu1 %v104_v4, %s135_s20  ;;  %vm69_vm11 = vcmask 195744   ;;  %vm75_vm12 = vcmask 162944   ;;  %vm81_vm13 = vcmask 130144   ;;  %vm87_vm14 = vcmask 97344  }
   0xb   :  { %37 = vrot.lane.b32.xlu2 %v106_v5, %s136_s23  ;;  %vm93_vm15 = vcmask 64544  }
  0x12   :  { %43 = vrot.lane.b32.xlu0 %v107_v6, %s137_s28  ;;  %49 = vrot.lane.b32.xlu1 %v108_v7, %s138_s29 }
  0x13   :  { %55 = vrot.lane.b32.xlu2 %v109_v8, %s139_s3 }
  0x1a   :  { %61 = vrot.lane.b32.xlu0 %v110_v9, %s140_s8  ;;  %67 = vrot.lane.b32.xlu1 %v111_v10, %s141_s9 }
  0x1b   :  { %73 = vrot.lane.b32.xlu2 %v112_v11, %s142_s12 }
  0x22   :  { %79 = vrot.lane.b32.xlu0 %v113_v12, %s143_s17  ;;  %85 = vrot.lane.b32.xlu1 %v114_v13, %s144_s18 }
  0x23   :  { %91 = vrot.lane.b32.xlu2 %v115_v14, %s145_s21 }
  0x5d   :  { %v32_v16 = vpop.permute.xlu2 %31  }
  0x65   :  { %v38_v17 = vpop.permute.xlu2 %37  }
  0x6d   :  { %v56_v18 = vpop.permute.xlu2 %55  }
  0x74   :  { %v8_v19 = vpop.permute.xlu0 %7   ;;  %v20_v20 = vpop.permute.xlu1 %19  }
  0x75   :  { %10 = vst.msk [vmem:[#allocation0] sm:$0x1] %vm9_vm1, %v8_v19   ;;  %v74_v21 = vpop.permute.xlu2 %73  }
  0x7c   :  { %v14_v22 = vpop.permute.xlu0 %13   ;;  %v26_v23 = vpop.permute.xlu1 %25  }
  0x7d   :  { %16 = vst.msk [vmem:[#allocation0] sm:$0x1] %vm15_vm2, %v14_v22   ;;  %v92_v24 = vpop.permute.xlu2 %91  }
  0x7e   :  { %22 = vst.msk [vmem:[#allocation0] sm:$0x1] %vm21_vm3, %v20_v20  }
  0x7f   :  { %28 = vst.msk [vmem:[#allocation0] sm:$0x1] %vm27_vm4, %v26_v23  }
  0x80   :  { %34 = vst.msk [vmem:[#allocation0] sm:$0x1] %vm33_vm5, %v32_v16  }
  0x81   :  { %40 = vst.msk [vmem:[#allocation0] sm:$0x1] %vm39_vm6, %v38_v17  }
  0x84   :  { %v44_v25 = vpop.permute.xlu0 %43   ;;  %v50_v26 = vpop.permute.xlu1 %49  }
  0x85   :  { %46 = vst.msk [vmem:[#allocation0] sm:$0x1] %vm45_vm7, %v44_v25  }
  0x86   :  { %52 = vst.msk [vmem:[#allocation0] sm:$0x1] %vm51_vm8, %v50_v26  }
  0x87   :  { %58 = vst.msk [vmem:[#allocation0] sm:$0x1] %vm57_vm9, %v56_v18  }
  0x8c   :  { %v62_v27 = vpop.permute.xlu0 %61   ;;  %v68_v28 = vpop.permute.xlu1 %67  }
  0x8d   :  { %64 = vst.msk [vmem:[#allocation0] sm:$0x1] %vm63_vm10, %v62_v27  }
  0x8e   :  { %70 = vst.msk [vmem:[#allocation0] sm:$0x1] %vm69_vm11, %v68_v28  }
  0x8f   :  { %76 = vst.msk [vmem:[#allocation0] sm:$0x1] %vm75_vm12, %v74_v21  }
  0x94   :  { %v80_v29 = vpop.permute.xlu0 %79   ;;  %v86_v30 = vpop.permute.xlu1 %85  }
  0x95   :  { %82 = vst.msk [vmem:[#allocation0] sm:$0x1] %vm81_vm13, %v80_v29  }
  0x96   :  { %88 = vst.msk [vmem:[#allocation0] sm:$0x1] %vm87_vm14, %v86_v30  }
  0x97   :  { %94 = vst.msk [vmem:[#allocation0] sm:$0x1] %vm93_vm15, %v92_v24  }
  0x9e   :  { %v97_v31 = vld [vmem:[#allocation0] sm:$0x1] }
  0x9f   :  { %100 = vst [vmem:[%s208_s1] sm:$0x1] %v97_v31 }

// kernel: reconstruct1_forward.5
= control target key start
LH: loop header
LB: loop body
LE: loop exit
PB: predicated region body
PF: predicated region fallthrough
CT: control target
= control target key end

     0   :  { %9 = vsyncpa [#allocation3], 0  ;;  %s829_s0 = inlined_call_operand.vmem [shape: f32[2,16,64], index: 0, kind: input, shape index: {}]   ;;  %s830_s1 = inlined_call_operand.vmem [shape: f32[1,64], index: 1, kind: input, shape index: {}]   ;;  %s831_s2 = inlined_call_operand.vmem [shape: f32[1,64], index: 2, kind: input, shape index: {}]   ;;  %s832_s3 = inlined_call_operand.vmem [shape: f32[4,64,16], index: 3, kind: input, shape index: {}]   ;;  %s833_s4 = inlined_call_operand.hbm [shape: f32[2,4,16,16], index: 4, kind: output, shape index: {}]  }
   0x1   :  { %11 = vsyncpa [#allocation3 + $0x1], 0  ;;  %s622_s15 = smov 0   ;;  %s624_s16 = smov 0  }
   0x2   :  { %s626_s17 = smov 0   ;;  %s628_s18 = smov 0  }
   0x3 LB: > { %s643_s19 = sadd.s32 4294967295, %s593_s18   ;;  %s436_s20 = sadd.s32 4294967294, %s593_s18   ;;  %s593_s18 = sphi %s628_s18, %s839_s18   ;;  %s589_s17 = sphi %s626_s17, %s838_s17   ;;  %s585_s16 = sphi %s624_s16, %s837_s16   ;;  %s581_s15 = sphi %s622_s15, %s836_s15  }
   0x4   : > { %s647_s21 = sadd.s32 1, %s593_s18   ;;  %s113_s22 = sadd.s32 1, %s589_s17 }
   0x5   : > { %s110_s23 = ssub.s32 %s593_s18, %s647_s21  ;;  %p123_p0 = scmp.ne.s32.totalorder %s589_s17, %s585_s16 }
   0x6   : > { %p111_p1 = scmp.eq.s32.totalorder %s110_s23, 0  ;;  %p124_p2 = scmp.eq.s32.totalorder %s643_s19, 1 }
   0x7   : > { %p129_p3 = scmp.ne.s32.totalorder %s585_s16, %s581_s15  ;;  %p130_p4 = scmp.eq.s32.totalorder %s436_s20, 1 }
   0x8   : > { %s658_s24 = scalar_select %p111_p1, %s589_s17, %s113_s22  }
   0x9   : > { %p660_p5 = por %p124_p2, %p123_p0  ;;  %p664_p6 = por %p130_p4, %p129_p3 }
   0xa   : > { %p439_p7 = scmp.ge.s32.totalorder %s593_s18, 1  ;;  %p165_p8 = scmp.lt.s32.totalorder %s593_s18, 3 }
   0xc   : > { %p166_p9 = pnand %p439_p7, %p165_p8 }
   0xd   : > { %p191_p10 = scmp.lt.s32.totalorder (!%p166_p9), %s643_s19, 1  ;;  %s188_s7 = sand.u32 (!%p166_p9), 1, %s585_s16  }
   0xe   : > { %169 = sbr.rel (%p166_p9) target bundleno = 181 (0xb5), region = 36  ;;  %s440_s8 = sshll.u32 (!%p166_p9), %s188_s7, 6 }
   0xf   : > { %s487_s10 = sshll.u32 (!%p166_p9), %s643_s19, 6  ;;  %s551_s30 = scalar_lea.hbm (!%p166_p9), %s833_s4, 128 }
  0x10   : > { %s370_s13 = scalar_lea.hbm (!%p166_p9), %s833_s4, %s487_s10 }
  0x11   : > { %s373_s20 = sshll.u32 (!%p166_p9), %s370_s13, 4  ;;  %s374_s20 = int_to_ptr.hbm [resolvable:$true] %s373_s20 }
  0x12   : > { %s545_s27 = sshra.s32 (!%p166_p9), %s374_s20, 4  ;;  %s546_s27 = int_to_ptr.hbm [resolvable:$true] %s545_s27 }
  0x13   : > { %v464_v0 = vld [vmem:[%s832_s3 + $0xb8] sm:$0xff]  ;;  %v463_v2 = vld [vmem:[%s832_s3 + $0xb0] sm:$0xff]  ;;  %v462_v4 = vld [vmem:[%s832_s3 + $0xa8] sm:$0xff]  ;;  %s192_s23 = scalar_select %p191_p10, %s643_s19, 1  ;;  %vm220_vm0 = vcmask 523264   ;;  %vm250_vm1 = vcmask 130048  }
  0x14   : > { %v476_v1 = vld [vmem:[%s832_s3 + $0xf8] sm:$0xff]  ;;  %305 = vmatpush.msra.mxu2 %v464_v0  ;;  %v475_v3 = vld [vmem:[%s832_s3 + $0xf0] sm:$0xff]  ;;  %v474_v5 = vld [vmem:[%s832_s3 + $0xe8] sm:$0xff]  ;;  %s359_s19 = scalar_lea.sflag [#allocation3], %s188_s7  ;;  %p552_p0 = scmp.lt.s32.totalorder %s546_s27, %s833_s4 }
  0x15   : > { %340 = vmatpush.msra.mxu3 %v476_v1  ;;  %v219_v6 = vld [vmem:[%s832_s3 + $0x38] sm:$0xff]  ;;  %v218_v8 = vld [vmem:[%s832_s3 + $0x30] sm:$0xff]  ;;  %v461_v10 = vld [vmem:[%s832_s3 + $0xa0] sm:$0xff]  ;;  %s486_s9 = sshll.u32 %s192_s23, 4  ;;  %s547_s23 = scalar_lea.hbm %s546_s27, 64 }
  0x16   : > { %v452_v7 = vld [vmem:[%s832_s3 + $0x78] sm:$0xff]  ;;  %306 = vmatpush.msra.mxu2 %v463_v2  ;;  %v451_v9 = vld [vmem:[%s832_s3 + $0x70] sm:$0xff]  ;;  %235 = vmatpush.msra.mxu0 %v219_v6  ;;  %v473_v11 = vld [vmem:[%s832_s3 + $0xe0] sm:$0xff]  ;;  %s717_s22 = scalar_lea.vmem %s829_s0, %s486_s9  ;;  %s190_s9 = scalar_lea.vmem [#allocation2], %s440_s8 }
  0x17   : > { %341 = vmatpush.msra.mxu3 %v475_v3  ;;  %270 = vmatpush.msra.mxu1 %v452_v7  ;;  %v217_v12 = vld [vmem:[%s832_s3 + $0x28] sm:$0xff]  ;;  %v460_v14 = vld [vmem:[%s832_s3 + $0x98] sm:$0xff]  ;;  %v459_v16 = vld [vmem:[%s832_s3 + $0x90] sm:$0xff]  ;;  %s371_s14 = sshll.u32 %s190_s9, 4  ;;  %p548_p11 = scmp.ne.s32.totalorder %s546_s27, %s547_s23  ;;  %s372_s14 = int_to_ptr.vmem [resolvable:$true] %s371_s14 }
  0x18   : > { %307 = vmatpush.msra.mxu2 %v462_v4  ;;  %v450_v13 = vld [vmem:[%s832_s3 + $0x68] sm:$0xff]  ;;  %236 = vmatpush.msra.mxu0 %v218_v8  ;;  %v472_v15 = vld [vmem:[%s832_s3 + $0xd8] sm:$0xff]  ;;  %v471_v17 = vld [vmem:[%s832_s3 + $0xd0] sm:$0xff]  ;;  %p553_p1 = scmp.lt.s32.totalorder %s551_s30, %s547_s23 }
  0x19   : > { %342 = vmatpush.msra.mxu3 %v474_v5  ;;  %271 = vmatpush.msra.mxu1 %v451_v9  ;;  %v216_v18 = vld [vmem:[%s832_s3 + $0x20] sm:$0xff]  ;;  %v215_v20 = vld [vmem:[%s832_s3 + $0x18] sm:$0xff]  ;;  %v458_v24 = vld [vmem:[%s832_s3 + $0x88] sm:$0xff]  ;;  %p549_p12 = pnand %p548_p11, %p660_p5 }
  0x1a   : > { %308 = vmatpush.msra.mxu2 %v461_v10  ;;  %v449_v19 = vld [vmem:[%s832_s3 + $0x60] sm:$0xff]  ;;  %237 = vmatpush.msra.mxu0 %v217_v12  ;;  %v448_v21 = vld [vmem:[%s832_s3 + $0x58] sm:$0xff]  ;;  %v470_v25 = vld [vmem:[%s832_s3 + $0xc8] sm:$0xff]  ;;  %p554_p2 = por %p553_p1, %p552_p0 }
  0x1b   : > { %343 = vmatpush.msra.mxu3 %v473_v11  ;;  %272 = vmatpush.msra.mxu1 %v450_v13  ;;  %v196_v22 = vld [vmem:[%s717_s22] sm:$0xff]  ;;  %v214_v28 = vld [vmem:[%s832_s3 + $0x10] sm:$0xff]  ;;  %v197_v32 = vld [vmem:[%s717_s22 + $0x8] sm:$0xff]  ;;  %p550_p13 = pneg %p549_p12 }
  0x1c   : > { %309 = vmatpush.msra.mxu2 %v460_v14  ;;  %v529_v23 = vld [vmem:[%s830_s1] ss:$0 sm:$0xff]  ;;  %238 = vmatpush.msra.mxu0 %v216_v18  ;;  %v447_v29 = vld [vmem:[%s832_s3 + $0x50] sm:$0xff]  ;;  %v213_v34 = vld [vmem:[%s832_s3 + $0x8] sm:$0xff] }
  0x1d   : > { %344 = vmatpush.msra.mxu3 %v472_v15  ;;  %273 = vmatpush.msra.mxu1 %v449_v19  ;;  %v530_v26 = vld [vmem:[%s831_s2] ss:$0 sm:$0xff]  ;;  %v202_v27 = vmul.f32 %v529_v23, %v196_v22  ;;  %v446_v35 = vld [vmem:[%s832_s3 + $0x48] sm:$0xff]  ;;  %v203_v36 = vmul.f32 %v529_v23, %v197_v32  ;;  %p555_p3 = pnand %p554_p2, %p550_p13 }
  0x1e   : > { %310 = vmatpush.msra.mxu2 %v459_v16  ;;  %239 = vmatpush.msra.mxu0 %v215_v20  ;;  %v457_v30 = vld [vmem:[%s832_s3 + $0x80] sm:$0xff] }
  0x1f   : > { %345 = vmatpush.msra.mxu3 %v471_v17  ;;  %274 = vmatpush.msra.mxu1 %v448_v21  ;;  %v469_v31 = vld [vmem:[%s832_s3 + $0xc0] sm:$0xff]  ;;  %v208_v33 = vadd.f32 %v530_v26, %v202_v27  ;;  %v209_v40 = vadd.f32 %v530_v26, %v203_v36 }
  0x20   : > { %311 = vmatpush.msra.mxu2 %v458_v24  ;;  %240 = vmatpush.msra.mxu0 %v214_v28  ;;  %v212_v38 = vld [vmem:[%s832_s3] sm:$0xff] }
  0x21   : > { %346 = vmatpush.msra.mxu3 %v470_v25  ;;  %275 = vmatpush.msra.mxu1 %v447_v29  ;;  %v210_v37 = vmax.f32 %v208_v33, 0.0  ;;  %v445_v39 = vld [vmem:[%s832_s3 + $0x40] sm:$0xff]  ;;  %v211_v41 = vmax.f32 %v209_v40, 0.0 }
  0x22   : > { %312 = vmatpush.msra.mxu2 %v457_v30  ;;  %241 = vmatpush.msra.mxu0 %v213_v34 }
  0x23   : > { %347 = vmatpush.msra.mxu3 %v469_v31  ;;  %276 = vmatpush.msra.mxu1 %v446_v35 }
  0x24   : > { %465 = vmatmul.msk.f32.vlgmr.msra.gmra.mxu2 %vm220_vm0, %v210_v37  ;;  %477 = vmatmul.msk.f32.vlgmr.msra.gmra.mxu3 %vm220_vm0, %v210_v37 }
  0x25   : > { %242 = vmatpush.msra.mxu0 %v212_v38  ;;  %277 = vmatpush.msra.mxu1 %v445_v39 }
  0x26   : > { %443 = vmatmul.msk.f32.vlgmr.msra.gmra.mxu0 %vm220_vm0, %v210_v37  ;;  %453 = vmatmul.msk.f32.vlgmr.msra.gmra.mxu1 %vm220_vm0, %v210_v37 }
  0x2c   : > { %466 = vmatmul.msk.f32.gmra.mxu2 %vm220_vm0, %v211_v41  ;;  %478 = vmatmul.msk.f32.gmra.mxu3 %vm220_vm0, %v211_v41 }
  0x2e   : > { %444 = vmatmul.msk.f32.gmra.mxu0 %vm220_vm0, %v211_v41  ;;  %454 = vmatmul.msk.f32.gmra.mxu1 %vm220_vm0, %v211_v41 }
  0xa3   : > { %v244_v42 = vpop.f32.mrf.mxu0  ;;  %v279_v43 = vpop.f32.mrf.mxu1 }
  0xa4   : > { %251 = vst.msk [vmem:[%s190_s9] sm:$0xff] %vm250_vm1, %v244_v42 }
  0xa5   : > { %455 = vst.msk [vmem:[%s190_s9 + $0x10] sm:$0xff] %vm250_vm1, %v279_v43 }
  0xa7   : > { %v314_v44 = vpop.f32.mrf.mxu2  ;;  %v349_v45 = vpop.f32.mrf.mxu3 }
  0xa8   : > { %467 = vst.msk [vmem:[%s190_s9 + $0x20] sm:$0xff] %vm250_vm1, %v314_v44 }
  0xa9   : > { %479 = vst.msk [vmem:[%s190_s9 + $0x30] sm:$0xff] %vm250_vm1, %v349_v45 }
  0xab   : > { %v247_v46 = vpop.f32.mrf.mxu0  ;;  %v282_v47 = vpop.f32.mrf.mxu1 }
  0xac   : > { %252 = vst.msk [vmem:[%s190_s9 + $0x8] sm:$0xff] %vm250_vm1, %v247_v46 }
  0xad   : > { %456 = vst.msk [vmem:[%s190_s9 + $0x18] sm:$0xff] %vm250_vm1, %v282_v47 }
  0xaf   : > { %v317_v48 = vpop.f32.mrf.mxu2  ;;  %v352_v49 = vpop.f32.mrf.mxu3 }
  0xb0   : > { %468 = vst.msk [vmem:[%s190_s9 + $0x28] sm:$0xff] %vm250_vm1, %v317_v48 }
  0xb1   : > { %480 = vst.msk [vmem:[%s190_s9 + $0x38] sm:$0xff] %vm250_vm1, %v352_v49 }
  0xb2   : > { %558 = shalt.err (!%p555_p3)
}
  0xb3   : > { %s595_s6 = smov 128   ;;  %s596_s7 = smov 8  }
  0xb4   : > { %488 = dma.vmem_to_hbm [thread:$0]  (%p660_p5), %s372_s14, 1024, %s374_s20, %s359_s19, %s595_s6, %s595_s6, %s596_s7  }
  0xb5 PF: > { %p494_p4 = scmp.ge.s32.totalorder %s593_s18, 2  ;;  %s388_s8 = sand.u32 1, %s581_s15  }
  0xb6   : > { %s389_s9 = scalar_lea.sflag [#allocation3], %s388_s8 }
  0xb7   : > { %p491_p7 = pnand %p494_p4, %p664_p6 }
  0xb9   : > { %p492_p8 = pneg %p491_p7 }
  0xbb   : > { %576 = dma.done.wait (%p492_p8), %s389_s9, 1024  }
  0xbc   : > { %578 = vsyncadd (%p492_p8), %s389_s9, 4294966272  ;;  %p14_p9 = scmp.ge.s32.totalorder %s647_s21, 4   ;;  %s836_s15 = smov %s585_s16 }
  0xbd   : > { %s837_s16 = smov %s589_s17  ;;  %s838_s17 = smov %s658_s24 }
  0xbe   : > { %s839_s18 = smov %s647_s21  ;;  %16 = sbr.rel (!%p14_p9) target bundleno = 3 (0x3), region = 77 }
  0xc3   :  { %395 = vsyncpa [#allocation3], 1 }
  0xc4   :  { %397 = vsyncpa [#allocation3 + $0x1], 1 }

// kernel: reconstruct1_forward.4
= control target key start
LH: loop header
LB: loop body
LE: loop exit
PB: predicated region body
PF: predicated region fallthrough
CT: control target
= control target key end

     0   :  { %s969_s13 = smov 0   ;;  %s1178_s0 = inlined_call_operand.vmem [shape: f32[2,8,32], index: 0, kind: input, shape index: {}]   ;;  %s1179_s1 = inlined_call_operand.vmem [shape: f32[1,32], index: 1, kind: input, shape index: {}]   ;;  %s1180_s2 = inlined_call_operand.vmem [shape: f32[1,32], index: 2, kind: input, shape index: {}]   ;;  %s1181_s3 = inlined_call_operand.vmem [shape: f32[2,32,72], index: 3, kind: input, shape index: {}]   ;;  %s1182_s4 = inlined_call_operand.vmem [shape: f32[1,72], index: 4, kind: input, shape index: {}]   ;;  %s1183_s5 = inlined_call_operand.vmem [shape: f32[2,18,8], index: 5, kind: input, shape index: {}]   ;;  %s1184_s6 = inlined_call_operand.vmem [shape: f32[3,72,64], index: 6, kind: input, shape index: {}]   ;;  %s1185_s7 = inlined_call_operand.vmem [shape: f32[64,4], index: 7, kind: input, shape index: {}]   ;;  %s1186_s8 = inlined_call_operand.vmem [shape: f32[2,16,64], index: 8, kind: output, shape index: {0}]   ;;  %s1187_s9 = inlined_call_operand.vmem [shape: f32[2,1,4], index: 9, kind: output, shape index: {1}]   ;;  %s1188_s10 = inlined_call_operand.vmem [shape: f32[2,1,4], index: 10, kind: output, shape index: {2}]  }
   0x1 LB: > { %s842_s14 = sadd.s32 4294967295, %s912_s13   ;;  %p846_p0 = scmp.ge.s32.totalorder %s912_s13, 1  ;;  %s912_s13 = sphi %s969_s13, %s21_s13  }
   0x2   : > { %p316_p1 = scmp.lt.s32.totalorder %s912_s13, 3 }
   0x4   : > { %p317_p2 = pnand %p846_p0, %p316_p1 }
   0x5   : > { %p359_p3 = scmp.lt.s32.totalorder (!%p317_p2), %s842_s14, 1 }
   0x6   : > { %320 = sbr.rel (%p317_p2) target bundleno = 588 (0x24c), region = 52 }
   0xb   : > { %v389_v0 = vld [vmem:[%s1181_s3 + $0x18] sm:$0xff]  ;;  %v388_v2 = vld [vmem:[%s1181_s3 + $0x10] sm:$0xff]  ;;  %v387_v4 = vld [vmem:[%s1181_s3 + $0x8] sm:$0xff]  ;;  %s1190_s14 = smov (!%p359_p3, %s842_s14), 1  ;;  %vm394_vm0 = vcmask 261120   ;;  %vm450_vm1 = vcmask 64512  }
   0xc   : > { %v854_v1 = vld [vmem:[%s1181_s3 + $0x38] sm:$0xff]  ;;  %410 = vmatpush.msra.mxu3 %v389_v0  ;;  %v853_v3 = vld [vmem:[%s1181_s3 + $0x30] sm:$0xff]  ;;  %v852_v5 = vld [vmem:[%s1181_s3 + $0x28] sm:$0xff]  ;;  %s847_s15 = sshll.u32 %s1190_s14, 3  ;;  %vm549_vm2 = vcmask 588800   ;;  %vm543_vm3 = vcmask 1046528   ;;  %s373_s21 = scalar_lea.vmem %s1188_s10, %s1190_s14 }
   0xd   : > { %438 = vmatpush.msra.mxu1 %v854_v1  ;;  %v903_v6 = vld [vmem:[%s1179_s1] ss:$0 sm:$0xff]  ;;  %s362_s18 = scalar_lea.vmem %s1178_s0, %s847_s15  ;;  %v528_v15 = vld [vmem:[%s1184_s6 + $0x38] sm:$0xff]  ;;  %v527_v16 = vld [vmem:[%s1184_s6 + $0x30] sm:$0xff]  ;;  %vm614_vm4 = vcmask 1045504   ;;  %s893_s15 = sshll.u32 %s1190_s14, 4 }
   0xe   : > { %411 = vmatpush.msra.mxu3 %v388_v2  ;;  %v386_v7 = vld [vmem:[%s1181_s3] sm:$0xff]  ;;  %v526_v17 = vld [vmem:[%s1184_s6 + $0x28] sm:$0xff]  ;;  %v856_v22 = vld [vmem:[%s1183_s5 + $0x18] sm:$0xff]  ;;  %vm649_vm5 = vcmask 523264   ;;  %vm701_vm6 = vcmask 24576   ;;  %s370_s24 = scalar_lea.vmem %s1187_s9, %s1190_s14 }
   0xf   : > { %439 = vmatpush.msra.mxu1 %v853_v3  ;;  %v851_v8 = vld [vmem:[%s1181_s3 + $0x20] sm:$0xff]  ;;  %v886_v23 = vld [vmem:[%s1184_s6 + $0xd0] sm:$0xff]  ;;  %v885_v24 = vld [vmem:[%s1184_s6 + $0xc8] sm:$0xff] }
  0x10   : > { %412 = vmatpush.msra.mxu3 %v387_v4  ;;  %v904_v9 = vld [vmem:[%s1180_s2] ss:$0 sm:$0xff]  ;;  %v419_v27 = vld [vmem:[%s1183_s5 + $0x8] sm:$0xff]  ;;  %v420_v32 = vld [vmem:[%s1183_s5 + $0x10] sm:$0x3] }
  0x11   : > { %440 = vmatpush.msra.mxu1 %v852_v5  ;;  %v374_v10 = vld [vmem:[%s362_s18] sm:$0xff]  ;;  %v873_v29 = vld [vmem:[%s1184_s6 + $0x88] sm:$0xff]  ;;  %v524_v34 = vld [vmem:[%s1184_s6 + $0x18] sm:$0xff]  ;;  %s367_s18 = scalar_lea.vmem %s1186_s8, %s893_s15 }
  0x12   : > { %413 = vmatpush.msra.mxu3 %v386_v7  ;;  %v379_v11 = vmul.f32 %v903_v6, %v374_v10  ;;  %v529_v14 = vld [vmem:[%s1184_s6 + $0x40] sm:$0xff]  ;;  %v858_v33 = vld [vmem:[%s1183_s5 + $0x28] sm:$0x3]  ;;  %v523_v35 = vld [vmem:[%s1184_s6 + $0x10] sm:$0xff] }
  0x13   : > { %441 = vmatpush.msra.mxu1 %v851_v8  ;;  %v525_v18 = vld [vmem:[%s1184_s6 + $0x20] sm:$0xff]  ;;  %v522_v36 = vld [vmem:[%s1184_s6 + $0x8] sm:$0xff]  ;;  %v871_v37 = vld [vmem:[%s1184_s6 + $0x78] sm:$0xff] }
  0x14   : > { %v384_v12 = vadd.f32 %v904_v9, %v379_v11  ;;  %v905_v19 = vld [vmem:[%s1182_s4] ss:$0 sm:$0xff]  ;;  %v870_v39 = vld [vmem:[%s1184_s6 + $0x70] sm:$0xff]  ;;  %v883_v40 = vld [vmem:[%s1184_s6 + $0xb8] sm:$0xff] }
  0x15   : > { %588 = vmatpush.msrb.mxu1 %v529_v14  ;;  %v418_v28 = vld [vmem:[%s1183_s5] sm:$0xff]  ;;  %v869_v42 = vld [vmem:[%s1184_s6 + $0x68] sm:$0xff]  ;;  %v882_v43 = vld [vmem:[%s1184_s6 + $0xb0] sm:$0xff] }
  0x16   : > { %v385_v13 = vmax.f32 %v384_v12, 0.0  ;;  %v857_v30 = vld [vmem:[%s1183_s5 + $0x20] sm:$0xff]  ;;  %v881_v45 = vld [vmem:[%s1184_s6 + $0xa8] sm:$0xff]  ;;  %v867_v46 = vld [vmem:[%s1184_s6 + $0x58] sm:$0xff] }
  0x17   : > { %589 = vmatpush.msrb.mxu1 %v528_v15  ;;  %v872_v31 = vld [vmem:[%s1184_s6 + $0x80] sm:$0xff]  ;;  %v866_v48 = vld [vmem:[%s1184_s6 + $0x50] sm:$0xff]  ;;  %v879_v49 = vld [vmem:[%s1184_s6 + $0x98] sm:$0xff] }
  0x18   : > { %850 = vmatmul.msk.f32.vlgmr.msra.gmra.mxu3 %vm394_vm0, %v385_v13  ;;  %855 = vmatmul.msk.f32.vlgmr.msra.gmra.mxu1 %vm394_vm0, %v385_v13  ;;  %v884_v38 = vld [vmem:[%s1184_s6 + $0xc0] sm:$0xff]  ;;  %v865_v50 = vld [vmem:[%s1184_s6 + $0x48] sm:$0xff]  ;;  %v878_v51 = vld [vmem:[%s1184_s6 + $0x90] sm:$0xff] }
  0x19   : > { %590 = vmatpush.msrb.mxu1 %v527_v16  ;;  %v521_v41 = vld [vmem:[%s1184_s6] sm:$0xff]  ;;  %v677_v7 = vld [vmem:[%s1185_s7 + $0x38] sm:$0xff]  ;;  %v676_v8 = vld [vmem:[%s1185_s7 + $0x30] sm:$0xff] }
  0x1a   : > { %v868_v44 = vld [vmem:[%s1184_s6 + $0x60] sm:$0xff]  ;;  %v675_v9 = vld [vmem:[%s1185_s7 + $0x28] sm:$0xff]  ;;  %v673_v11 = vld [vmem:[%s1185_s7 + $0x18] sm:$0xff] }
  0x1b   : > { %591 = vmatpush.msrb.mxu1 %v526_v17  ;;  %v880_v47 = vld [vmem:[%s1184_s6 + $0xa0] sm:$0xff]  ;;  %v672_v12 = vld [vmem:[%s1185_s7 + $0x10] sm:$0xff]  ;;  %v671_v13 = vld [vmem:[%s1185_s7 + $0x8] sm:$0xff] }
  0x1c   : > { %v674_v10 = vld [vmem:[%s1185_s7 + $0x20] sm:$0xff] }
  0x1d   : > { %592 = vmatpush.msrb.mxu1 %v525_v18  ;;  %v670_v14 = vld [vmem:[%s1185_s7] sm:$0xff] }
  0x1f   : > { %593 = vmatpush.msrb.mxu1 %v524_v34 }
  0x21   : > { %594 = vmatpush.msrb.mxu1 %v523_v35 }
  0x23   : > { %595 = vmatpush.msrb.mxu1 %v522_v36 }
  0x25   : > { %596 = vmatpush.msrb.mxu1 %v521_v41 }
  0x95   : > { %v443_v20 = vpop.f32.mrf.mxu1 }
  0x96   : > { %v444_v21 = vadd.f32 %v905_v19, %v443_v20 }
  0x98   : > { %475 = vmatpush.msra.mxu2 %v444_v21 }
  0x99   : > { %859 = vmatmul.msk.f32.vlgmr.msra.gmra.mxu2 %vm450_vm1, %v856_v22 }
  0x9a   : > { %631 = vmatpush.msrb.mxu2 %v886_v23 }
  0x9b   : > { %v415_v25 = vpop.f32.mrf.mxu3 }
  0x9c   : > { %v416_v26 = vadd.f32 %v905_v19, %v415_v25  ;;  %632 = vmatpush.msrb.mxu2 %v885_v24 }
  0x9e   : > { %510 = vmatpush.msra.mxu0 %v416_v26  ;;  %894 = vmatpush.msrb.mxu3 %v416_v26 }
  0x9f   : > { %863 = vmatmul.msk.f32.vlgmr.msrb.gmra.mxu3 %vm450_vm1, %v419_v27  ;;  %862 = vmatmul.msk.f32.vlgmr.msra.gmra.mxu0 %vm450_vm1, %v418_v28 }
  0xa0   : > { %561 = vmatpush.msrb.mxu0 %v873_v29  ;;  %633 = vmatpush.msrb.mxu2 %v884_v38 }
  0xa1   : > { %860 = vmatmul.msk.f32.gmra.mxu2 %vm450_vm1, %v857_v30  ;;  %689 = vmatpush.msra.mxu3 %v677_v7 }
  0xa2   : > { %562 = vmatpush.msrb.mxu0 %v872_v31  ;;  %634 = vmatpush.msrb.mxu2 %v883_v40 }
  0xa3   : > { %690 = vmatpush.msra.mxu3 %v676_v8 }
  0xa4   : > { %563 = vmatpush.msrb.mxu0 %v871_v37  ;;  %635 = vmatpush.msrb.mxu2 %v882_v43 }
  0xa5   : > { %691 = vmatpush.msra.mxu3 %v675_v9 }
  0xa6   : > { %564 = vmatpush.msrb.mxu0 %v870_v39  ;;  %636 = vmatpush.msrb.mxu2 %v881_v45 }
  0xa7   : > { %864 = vmatmul.msk.f32.gmra.mxu3 %vm450_vm1, %v420_v32 }
  0xa8   : > { %565 = vmatpush.msrb.mxu0 %v869_v42  ;;  %637 = vmatpush.msrb.mxu2 %v880_v47 }
  0xa9   : > { %861 = vmatmul.msk.f32.gmra.mxu2 %vm450_vm1, %v858_v33  ;;  %692 = vmatpush.msra.mxu3 %v674_v10 }
  0xaa   : > { %566 = vmatpush.msrb.mxu0 %v868_v44  ;;  %638 = vmatpush.msrb.mxu2 %v879_v49 }
  0xab   : > { %693 = vmatpush.msra.mxu3 %v673_v11 }
  0xac   : > { %567 = vmatpush.msrb.mxu0 %v867_v46  ;;  %639 = vmatpush.msrb.mxu2 %v878_v51 }
  0xad   : > { %694 = vmatpush.msra.mxu3 %v672_v12 }
  0xae   : > { %568 = vmatpush.msrb.mxu0 %v866_v48 }
  0xaf   : > { %695 = vmatpush.msra.mxu3 %v671_v13 }
  0xb0   : > { %569 = vmatpush.msrb.mxu0 %v865_v50 }
  0xb1   : > { %696 = vmatpush.msra.mxu3 %v670_v14 }
  0xb2   : > { %722 = vmatpush.msra.mxu0 %v677_v7 }
  0xb4   : > { %723 = vmatpush.msra.mxu0 %v676_v8 }
  0xb6   : > { %724 = vmatpush.msra.mxu0 %v675_v9 }
  0xb8   : > { %725 = vmatpush.msra.mxu0 %v674_v10 }
  0xba   : > { %726 = vmatpush.msra.mxu0 %v673_v11 }
  0xbc   : > { %727 = vmatpush.msra.mxu0 %v672_v12 }
  0xbe   : > { %728 = vmatpush.msra.mxu0 %v671_v13 }
  0xc0   : > { %729 = vmatpush.msra.mxu0 %v670_v14 }
 0x11c   : > { %v477_v52 = vpop.f32.mrf.mxu2  ;;  %v512_v53 = vpop.f32.mrf.mxu0 }
 0x11d   : > { %v513_v54 = vadd.f32 %v512_v53, %v477_v52 }
 0x11f   : > { %876 = vmatmul.msk.f32.vlgmr.msrb.gmra.mxu1 %vm549_vm2, %v513_v54  ;;  %v544_v58 = vrot.slane %v513_v54, 1  ;;  %v615_v59 = vrot.slane %v513_v54, 2 }
 0x122   : > { %v515_v55 = vpop.f32.mrf.mxu3 }
 0x124   : > { %v480_v56 = vpop.f32.mrf.mxu2 }
 0x125   : > { %v516_v57 = vadd.f32 %v515_v55, %v480_v56 }
 0x127   : > { %v545_v60 = vrot.slane %v516_v57, 1  ;;  %v616_v61 = vrot.slane %v516_v57, 2  ;;  %877 = vmatmul.msk.f32.gmra.mxu1 %vm549_vm2, %v516_v57 }
 0x129   : > { %v546_v62 = vsel %vm543_vm3, %v544_v58, %v545_v60  ;;  %v617_v63 = vsel %vm614_vm4, %v615_v59, %v616_v61 }
 0x12a   : > { %874 = vmatmul.msk.f32.vlgmr.msrb.gmra.mxu0 %vm549_vm2, %v546_v62  ;;  %887 = vmatmul.msk.f32.vlgmr.msrb.gmra.mxu2 %vm549_vm2, %v617_v63  ;;  %v518_v0 = vpop.f32.mrf.mxu3 }
 0x12c   : > { %v483_v1 = vpop.f32.mrf.mxu2 }
 0x12d   : > { %v519_v2 = vadd.f32 %v518_v0, %v483_v1 }
 0x12f   : > { %v547_v3 = vrot.slane %v519_v2, 1  ;;  %v618_v4 = vrot.slane %v519_v2, 2 }
 0x131   : > { %v548_v5 = vsel %vm543_vm3, %v545_v60, %v547_v3  ;;  %v619_v6 = vsel %vm614_vm4, %v616_v61, %v618_v4 }
 0x132   : > { %875 = vmatmul.msk.f32.gmra.mxu0 %vm549_vm2, %v548_v5  ;;  %888 = vmatmul.msk.f32.gmra.mxu2 %vm549_vm2, %v619_v6 }
 0x19c   : > { %v598_v16 = vpop.f32.mrf.mxu1 }
 0x1a4   : > { %v601_v21 = vpop.f32.mrf.mxu1 }
 0x1a7   : > { %v571_v15 = vpop.f32.mrf.mxu0 }
 0x1a8   : > { %v599_v17 = vadd.f32 %v598_v16, %v571_v15 }
 0x1ad   : > { %v641_v18 = vpop.f32.mrf.mxu2 }
 0x1ae   : > { %v647_v19 = vadd.f32 %v641_v18, %v599_v17 }
 0x1af   : > { %v574_v20 = vpop.f32.mrf.mxu0 }
 0x1b0   : > { %735 = vst.msk [vmem:[%s367_s18] sm:$0xff] %vm649_vm5, %v647_v19  ;;  %v602_v22 = vadd.f32 %v601_v21, %v574_v20  ;;  %v659_v24 = vmul.f32 %v647_v19, %v647_v19  ;;  %v650_v26 = vsel %vm649_vm5, %v647_v19, 0.0 }
 0x1b2   : > { %v661_v30 = vsel %vm649_vm5, %v659_v24, 0.0 }
 0x1b5   : > { %v644_v23 = vpop.f32.mrf.mxu2 }
 0x1b6   : > { %v648_v25 = vadd.f32 %v644_v23, %v602_v22 }
 0x1b8   : > { %v651_v27 = vsel %vm649_vm5, %v648_v25, 0.0  ;;  %v660_v28 = vmul.f32 %v648_v25, %v648_v25  ;;  %736 = vst.msk [vmem:[%s367_s18 + $0x8] sm:$0xff] %vm649_vm5, %v648_v25 }
 0x1b9   : > { %v652_v29 = vadd.f32 %v651_v27, %v650_v26 }
 0x1ba   : > { %v662_v31 = vsel %vm649_vm5, %v660_v28, 0.0 }
 0x1bb   : > { %v653_v32 = vrot.slane %v652_v29, 4  ;;  %v663_v33 = vadd.f32 %v662_v31, %v661_v30 }
 0x1bd   : > { %v654_v34 = vadd.f32 %v653_v32, %v652_v29  ;;  %v664_v35 = vrot.slane %v663_v33, 4 }
 0x1bf   : > { %v655_v36 = vrot.slane %v654_v34, 2  ;;  %v665_v37 = vadd.f32 %v664_v35, %v663_v33 }
 0x1c1   : > { %v656_v38 = vadd.f32 %v655_v36, %v654_v34  ;;  %v666_v39 = vrot.slane %v665_v37, 2 }
 0x1c3   : > { %v657_v40 = vrot.slane %v656_v38, 1  ;;  %v667_v41 = vadd.f32 %v666_v39, %v665_v37 }
 0x1c5   : > { %v658_v42 = vadd.f32 %v657_v40, %v656_v38  ;;  %v668_v43 = vrot.slane %v667_v41, 1 }
 0x1c7   : > { %889 = vmatmul.msk.f32.vlgmr.msra.gmra.mxu3 %vm649_vm5, %v658_v42  ;;  %v669_v44 = vadd.f32 %v668_v43, %v667_v41 }
 0x1c9   : > { %890 = vmatmul.msk.f32.vlgmr.msra.gmra.mxu0 %vm649_vm5, %v669_v44 }
 0x246   : > { %v731_v45 = vpop.f32.mrf.mxu0 }
 0x247   : > { %734 = vst.msk [vmem:[%s373_s21] sm:$0x1] %vm701_vm6, %v731_v45 }
 0x24a   : > { %v698_v46 = vpop.f32.mrf.mxu3 }
 0x24b   : > { %702 = vst.msk [vmem:[%s370_s24] sm:$0x1] %vm701_vm6, %v698_v46 }
 0x24c PF: > { %s21_s13 = sadd.s32 1, %s912_s13  }
 0x24d   : > { %p18_p4 = scmp.ge.s32.totalorder %s21_s13, 4  }
 0x24f   :  { %20 = sbr.rel (!%p18_p4) target bundleno = 1 (0x1), region = 110 }

</bundles_post_ra>
